<compile_context>
chip_gen: v7x
topology: tpu7x:2x2x1
jax: 0.10.0
libtpu: 0.0.40
codegen_flags: <defaults>
</compile_context>

<pallas_src>
import jax
import jax.numpy as jnp
from jax.experimental import pallas as pl
from jax.experimental.pallas import tpu as pltpu

LANE = 128
SUBLANE = 8


def _round_up(x, m):
    return (x + m - 1) // m * m


def encoder_gru_kernel(ids_ref, tab_ref, whh_ref, bcomb_ref, bhn_ref, out_ref, gi_ref):
    """Single-invocation GRU encoder.

    ids_ref   : (S*B_pad, 1)      int32  token ids, time-major, batch padded
    tab_ref   : (V_pad, 3*H_pad)  bf16   fused (embedding @ W_ih^T), gate blocks r|z|n
    whh_ref   : (H_pad, 3*H_pad)  bf16   hidden->hidden weights, same gate layout
    bcomb_ref : (1, 3*H_pad)      f32    b_ih(all) + b_hh(r,z) folded together
    bhn_ref   : (1, H_pad)        f32    b_hh(n) (must stay inside r*(...))
    out_ref   : (S, B_pad, H_pad) f32    per-step hidden states
    gi_ref    : (S*B_pad, 3*H_pad) f32   VMEM scratch: hoisted input pre-activations
    """
    S, BP, HP = out_ref.shape
    VP = tab_ref.shape[0]
    SB = S * BP

    # ---- hoisted: embedding gather fused with the input projection, all timesteps ----
    # one-hot(id) @ table is an exact row gather (bf16 1.0 * bf16 value, f32 accumulate)
    ids = ids_ref[...]                                                  # (SB, 1) int32
    iota = jax.lax.broadcasted_iota(jnp.int32, (SB, VP), 1)             # (SB, VP)
    onehot = jnp.where(iota == ids, 1.0, 0.0).astype(jnp.bfloat16)      # (SB, VP) bf16
    gi_ref[...] = (
        jnp.dot(onehot, tab_ref[...], preferred_element_type=jnp.float32)
        + bcomb_ref[...]
    )                                                                   # (SB, 3*HP) f32

    whh = whh_ref[...]          # (HP, 3*HP) bf16, VMEM-resident
    b_hn = bhn_ref[...]         # (1, HP) f32

    # PyTorch GRU default h0 = 0 (padded lanes/rows stay harmless because of this).
    h = jnp.zeros((BP, HP), jnp.float32)
    h_bf = jnp.zeros((BP, HP), jnp.bfloat16)   # bf16 shadow feeding the MXU

    # Statically unrolled recurrence: only h @ W_hh is on the serial critical path.
    for t in range(S):
        gi = gi_ref[pl.ds(t * BP, BP), :]                               # static slice load
        gh = jnp.dot(h_bf, whh, preferred_element_type=jnp.float32)     # (BP, 3*HP)
        r = jax.nn.sigmoid(gi[:, :HP] + gh[:, :HP])
        z = jax.nn.sigmoid(gi[:, HP:2 * HP] + gh[:, HP:2 * HP])
        n = jnp.tanh(gi[:, 2 * HP:] + r * (gh[:, 2 * HP:] + b_hn))
        h = n + z * (h - n)                                             # == (1-z)*n + z*h
        h_bf = h.astype(jnp.bfloat16)
        out_ref[t] = h


def make_encoder_params(key, input_size, embedding_dim, hidden_dim):
    """Deterministic synthetic parameters matching the PyTorch module shapes."""
    keys = jax.random.split(key, 5)
    scale = 0.1
    return {
        # nn.Embedding(input_size, embedding_dim)
        "embedding": scale * jax.random.normal(keys[0], (input_size, embedding_dim), jnp.float32),
        # nn.GRU(embedding_dim, hidden_dim, batch_first=True): weight_ih_l0 (3H,E), weight_hh_l0 (3H,H)
        "w_ih": scale * jax.random.normal(keys[1], (3 * hidden_dim, embedding_dim), jnp.float32),
        "w_hh": scale * jax.random.normal(keys[2], (3 * hidden_dim, hidden_dim), jnp.float32),
        "b_ih": scale * jax.random.normal(keys[3], (3 * hidden_dim,), jnp.float32),
        "b_hh": scale * jax.random.normal(keys[4], (3 * hidden_dim,), jnp.float32),
    }


def prepare_kernel_params(params):
    """One-time layout transform (NOT per forward call):
    fuse embedding with W_ih into one table, pad to lane multiples, gate-block-align,
    fold the constant biases, pre-transpose W_hh, bf16-cast matmul operands."""
    V, E = params["embedding"].shape
    H = params["w_hh"].shape[1]
    HP = _round_up(H, LANE)
    VP = _round_up(V, LANE)

    emb = params["embedding"].astype(jnp.float32)        # (V, E)
    w_ih3 = params["w_ih"].reshape(3, H, E)              # gates r|z|n
    w_hh3 = params["w_hh"].reshape(3, H, H)
    b_ih3 = params["b_ih"].reshape(3, H)
    b_hh3 = params["b_hh"].reshape(3, H)

    # Fused table: table[v, g, :] = emb[v] @ W_ih[g]^T  (f32 compute, single bf16 round).
    tab = jnp.einsum("ve,ghe->vgh", emb, w_ih3)                          # (V, 3, H)
    tab = jnp.pad(tab, ((0, VP - V), (0, 0), (0, HP - H)))
    emb_wih_t = tab.reshape(VP, 3 * HP).astype(jnp.bfloat16)             # (VP, 3*HP)

    # W_hh^T, gate-blocked; zero rows for padded hidden input dims.
    w_hh_p = jnp.pad(w_hh3, ((0, 0), (0, HP - H), (0, HP - H)))          # (3, HP_out, HP_in)
    w_hh_t = jnp.transpose(w_hh_p, (2, 0, 1)).reshape(HP, 3 * HP).astype(jnp.bfloat16)

    # r = sig(gi_r + b_ir + gh_r + b_hr), z likewise -> fold b_ih(all) + b_hh(r,z) into gi.
    comb3 = b_ih3 + jnp.concatenate([b_hh3[:2], jnp.zeros((1, H), jnp.float32)], axis=0)
    b_comb = jnp.pad(comb3, ((0, 0), (0, HP - H))).reshape(1, 3 * HP).astype(jnp.float32)
    # n = tanh(gi_n + b_in + r*(gh_n + b_hn)) -> b_hn must stay per-step.
    b_hn = jnp.pad(b_hh3[2], (0, HP - H)).reshape(1, HP).astype(jnp.float32)

    return {"emb_wih_t": emb_wih_t, "w_hh_t": w_hh_t, "b_comb": b_comb, "b_hn": b_hn}


def encoder_forward(kparams, src, hidden_dim):
    """Pallas-backed equivalent of Encoder.forward (eval mode).

    src: int32 (B, S) token ids (batch_first=True, as in the module)
    returns: (outputs (B, S, H) f32, hidden (1, B, H) f32)
    """
    B, S = src.shape
    HP = kparams["w_hh_t"].shape[0]
    BP = _round_up(B, SUBLANE)

    # Token ids, time-major, batch padded with id 0 (padded rows are sliced away).
    ids = jnp.pad(src.T.astype(jnp.int32), ((0, 0), (0, BP - B)))        # (S, BP)
    ids = ids.reshape(S * BP, 1)

    outputs_pad = pl.pallas_call(
        encoder_gru_kernel,
        out_shape=jax.ShapeDtypeStruct((S, BP, HP), jnp.float32),
        # Single invocation, everything VMEM-resident (total < 1 MiB at these sizes).
        in_specs=[pl.BlockSpec(memory_space=pltpu.MemorySpace.VMEM)] * 5,
        out_specs=pl.BlockSpec(memory_space=pltpu.MemorySpace.VMEM),
        scratch_shapes=[pltpu.VMEM((S * BP, 3 * HP), jnp.float32)],
    )(ids, kparams["emb_wih_t"], kparams["w_hh_t"], kparams["b_comb"], kparams["b_hn"])

    outputs_sbh = outputs_pad[:, :B, :hidden_dim]         # strip padding, (S, B, H)
    # Module is batch_first=True -> keep the (B, S, H) contract (layout plumbing only).
    outputs = jnp.transpose(outputs_sbh, (1, 0, 2))       # (B, S, H)
    hidden = outputs_sbh[-1][None]                        # (1, B, H) final state (n_layers=1)
    return outputs, hidden


def _reference_forward_f32(params, src):
    """Full-f32 PyTorch-equivalent math (eval mode)."""
    H = params["w_hh"].shape[1]
    B, S = src.shape
    x_seq = jnp.take(params["embedding"], src, axis=0)    # (B, S, E)
    w_ih_t = params["w_ih"].T
    w_hh_t = params["w_hh"].T
    b_ih, b_hh = params["b_ih"], params["b_hh"]
    h = jnp.zeros((B, H), jnp.float32)
    outs = []
    for t in range(S):
        gi = x_seq[:, t] @ w_ih_t + b_ih
        gh = h @ w_hh_t + b_hh
        r = jax.nn.sigmoid(gi[:, :H] + gh[:, :H])
        z = jax.nn.sigmoid(gi[:, H:2 * H] + gh[:, H:2 * H])
        n = jnp.tanh(gi[:, 2 * H:] + r * gh[:, 2 * H:])
        h = (1.0 - z) * n + z * h
        outs.append(h)
    return jnp.stack(outs, axis=1), h[None]


def _reference_forward_mirror(kparams, src, hidden_dim):
    """Pure-JAX reference mirroring the kernel's numerics (bf16 fused table / matmuls)."""
    B, S = src.shape
    HP = kparams["w_hh_t"].shape[0]
    tab = kparams["emb_wih_t"].astype(jnp.float32)        # exact values of the bf16 table
    whh = kparams["w_hh_t"]
    b_comb, b_hn = kparams["b_comb"], kparams["b_hn"]
    gi_all = tab[src] + b_comb                            # (B, S, 3*HP)
    h = jnp.zeros((B, HP), jnp.float32)
    outs = []
    for t in range(S):
        gi = gi_all[:, t]
        gh = jnp.dot(h.astype(jnp.bfloat16), whh, preferred_element_type=jnp.float32)
        r = jax.nn.sigmoid(gi[:, :HP] + gh[:, :HP])
        z = jax.nn.sigmoid(gi[:, HP:2 * HP] + gh[:, HP:2 * HP])
        n = jnp.tanh(gi[:, 2 * HP:] + r * (gh[:, 2 * HP:] + b_hn))
        h = n + z * (h - n)
        outs.append(h[:, :hidden_dim])
    return jnp.stack(outs, axis=1), outs[-1][None]


if __name__ == "__main__":
    # Small shapes consistent with the module's forward.
    input_size = 64       # vocabulary size
    embedding_dim = 32
    hidden_dim = 32
    batch = 4
    seq_len = 8

    key = jax.random.PRNGKey(0)
    pkey, skey = jax.random.split(key)

    params = make_encoder_params(pkey, input_size, embedding_dim, hidden_dim)
    kparams = prepare_kernel_params(params)   # one-time: fuse / pad / transpose / bf16-cast
    src = jax.random.randint(skey, (batch, seq_len), 0, input_size, dtype=jnp.int32)

    outputs, hidden = encoder_forward(kparams, src, hidden_dim)
    jax.block_until_ready((outputs, hidden))

    assert outputs.shape == (batch, seq_len, hidden_dim)
    assert hidden.shape == (1, batch, hidden_dim)

    # Tight check vs a reference mirroring the kernel's bf16 numerics.
    ref_out_m, ref_h_m = _reference_forward_mirror(kparams, src, hidden_dim)
    assert jnp.allclose(outputs, ref_out_m, atol=5e-3, rtol=5e-3), \
        float(jnp.max(jnp.abs(outputs - ref_out_m)))
    assert jnp.allclose(hidden, ref_h_m, atol=5e-3, rtol=5e-3)

    # Looser check vs the full-f32 (PyTorch-equivalent) math: within bf16 error.
    ref_out_f, ref_h_f = _reference_forward_f32(params, src)
    assert jnp.allclose(outputs, ref_out_f, atol=3e-2, rtol=3e-2), \
        float(jnp.max(jnp.abs(outputs - ref_out_f)))
    assert jnp.allclose(hidden, ref_h_f, atol=3e-2, rtol=3e-2)

    print("KERNEL_OK")
</pallas_src>

<mosaic_0001>
module attributes {stable_mosaic.version = 11 : i64} {
  func.func @encoder_gru_kernel(%arg0: memref<64x1xi32, #tpu.memory_space<vmem>>, %arg1: memref<128x384xbf16, #tpu.memory_space<vmem>>, %arg2: memref<128x384xbf16, #tpu.memory_space<vmem>>, %arg3: memref<1x384xf32, #tpu.memory_space<vmem>>, %arg4: memref<1x128xf32, #tpu.memory_space<vmem>>, %arg5: memref<8x8x128xf32, #tpu.memory_space<vmem>>, %arg6: memref<64x384xf32, #tpu.memory_space<vmem>>) attributes {dimension_semantics = [], scalar_prefetch = 0 : i64, scratch_operands = 1 : i64, tpu.core_type = #tpu.core_type<tc>} {
    %c0 = arith.constant 0 : index
    %c0_0 = arith.constant 0 : index
    %0 = vector.load %arg0[%c0, %c0_0] : memref<64x1xi32, #tpu.memory_space<vmem>>, vector<64x1xi32>
    %1 = tpu.iota {dimensions = array<i32: 1>} : vector<64x128xi32>
    %2 = vector.broadcast %0 : vector<64x1xi32> to vector<64x128xi32>
    %3 = arith.cmpi eq, %1, %2 : vector<64x128xi32>
    %cst = arith.constant 1.000000e+00 : f32
    %cst_1 = arith.constant 0.000000e+00 : f32
    %4 = vector.broadcast %cst : f32 to vector<64x128xf32>
    %5 = vector.broadcast %cst_1 : f32 to vector<64x128xf32>
    %6 = arith.select %3, %4, %5 : vector<64x128xi1>, vector<64x128xf32>
    %7 = arith.truncf %6 : vector<64x128xf32> to vector<64x128xbf16>
    %c0_2 = arith.constant 0 : index
    %c0_3 = arith.constant 0 : index
    %8 = vector.load %arg1[%c0_2, %c0_3] : memref<128x384xbf16, #tpu.memory_space<vmem>>, vector<128x384xbf16>
    %cst_4 = arith.constant dense<0.000000e+00> : vector<64x384xf32>
    %9 = tpu.matmul %7, %8, %cst_4 {dimension_numbers = #tpu.dot_dimension_numbers<[1], [0], [0], [1], [0, 0, 1, 1], [], []>} : vector<64x128xbf16>, vector<128x384xbf16>, vector<64x384xf32> -> vector<64x384xf32>
    %c0_5 = arith.constant 0 : index
    %c0_6 = arith.constant 0 : index
    %10 = vector.load %arg3[%c0_5, %c0_6] : memref<1x384xf32, #tpu.memory_space<vmem>>, vector<1x384xf32>
    %11 = vector.broadcast %10 : vector<1x384xf32> to vector<64x384xf32>
    %12 = arith.addf %9, %11 : vector<64x384xf32>
    %c0_7 = arith.constant 0 : index
    %c0_8 = arith.constant 0 : index
    %13 = vector.load %arg6[%c0_7, %c0_8] : memref<64x384xf32, #tpu.memory_space<vmem>>, vector<64x384xf32>
    tpu.vector_store %arg6[%c0_7, %c0_8], %12 {strides = array<i32>} : memref<64x384xf32, #tpu.memory_space<vmem>>, vector<64x384xf32>,
    %c0_9 = arith.constant 0 : index
    %c0_10 = arith.constant 0 : index
    %14 = vector.load %arg2[%c0_9, %c0_10] : memref<128x384xbf16, #tpu.memory_space<vmem>>, vector<128x384xbf16>
    %c0_11 = arith.constant 0 : index
    %c0_12 = arith.constant 0 : index
    %15 = vector.load %arg4[%c0_11, %c0_12] : memref<1x128xf32, #tpu.memory_space<vmem>>, vector<1x128xf32>
    %cst_13 = arith.constant 0.000000e+00 : f32
    %16 = vector.broadcast %cst_13 : f32 to vector<8x128xf32>
    %cst_14 = arith.constant 0.000000e+00 : bf16
    %17 = vector.broadcast %cst_14 : bf16 to vector<8x128xbf16>
    %c0_15 = arith.constant 0 : index
    %c0_16 = arith.constant 0 : index
    %18 = vector.load %arg6[%c0_15, %c0_16] : memref<64x384xf32, #tpu.memory_space<vmem>>, vector<8x384xf32>
    %cst_17 = arith.constant dense<0.000000e+00> : vector<8x384xf32>
    %19 = tpu.matmul %17, %14, %cst_17 {dimension_numbers = #tpu.dot_dimension_numbers<[1], [0], [0], [1], [0, 0, 1, 1], [], []>} : vector<8x128xbf16>, vector<128x384xbf16>, vector<8x384xf32> -> vector<8x384xf32>
    %20 = vector.extract_strided_slice %18 {offsets = [0, 0], sizes = [8, 128], strides = [1, 1]} : vector<8x384xf32> to vector<8x128xf32>
    %21 = vector.extract_strided_slice %19 {offsets = [0, 0], sizes = [8, 128], strides = [1, 1]} : vector<8x384xf32> to vector<8x128xf32>
    %22 = arith.addf %20, %21 : vector<8x128xf32>
    %23 = arith.negf %22 : vector<8x128xf32>
    %24 = math.exp %23 : vector<8x128xf32>
    %cst_18 = arith.constant 1.000000e+00 : f32
    %25 = vector.broadcast %cst_18 : f32 to vector<8x128xf32>
    %26 = arith.addf %25, %24 : vector<8x128xf32>
    %27 = arith.divf %25, %26 : vector<8x128xf32>
    %28 = vector.extract_strided_slice %18 {offsets = [0, 128], sizes = [8, 128], strides = [1, 1]} : vector<8x384xf32> to vector<8x128xf32>
    %29 = vector.extract_strided_slice %19 {offsets = [0, 128], sizes = [8, 128], strides = [1, 1]} : vector<8x384xf32> to vector<8x128xf32>
    %30 = arith.addf %28, %29 : vector<8x128xf32>
    %31 = arith.negf %30 : vector<8x128xf32>
    %32 = math.exp %31 : vector<8x128xf32>
    %cst_19 = arith.constant 1.000000e+00 : f32
    %33 = vector.broadcast %cst_19 : f32 to vector<8x128xf32>
    %34 = arith.addf %33, %32 : vector<8x128xf32>
    %35 = arith.divf %33, %34 : vector<8x128xf32>
    %36 = vector.extract_strided_slice %18 {offsets = [0, 256], sizes = [8, 128], strides = [1, 1]} : vector<8x384xf32> to vector<8x128xf32>
    %37 = vector.extract_strided_slice %19 {offsets = [0, 256], sizes = [8, 128], strides = [1, 1]} : vector<8x384xf32> to vector<8x128xf32>
    %38 = vector.broadcast %15 : vector<1x128xf32> to vector<8x128xf32>
    %39 = arith.addf %37, %38 : vector<8x128xf32>
    %40 = arith.mulf %27, %39 : vector<8x128xf32>
    %41 = arith.addf %36, %40 : vector<8x128xf32>
    %42 = math.tanh %41 : vector<8x128xf32>
    %43 = arith.subf %16, %42 : vector<8x128xf32>
    %44 = arith.mulf %35, %43 : vector<8x128xf32>
    %45 = arith.addf %42, %44 : vector<8x128xf32>
    %46 = arith.truncf %45 : vector<8x128xf32> to vector<8x128xbf16>
    %c0_20 = arith.constant 0 : index
    %c0_21 = arith.constant 0 : index
    %c0_22 = arith.constant 0 : index
    %47 = vector.load %arg5[%c0_20, %c0_21, %c0_22] : memref<8x8x128xf32, #tpu.memory_space<vmem>>, vector<1x8x128xf32>
    %48 = vector.shape_cast %47 : vector<1x8x128xf32> to vector<8x128xf32>
    %49 = vector.shape_cast %45 : vector<8x128xf32> to vector<1x8x128xf32>
    tpu.vector_store %arg5[%c0_20, %c0_21, %c0_22], %49 {strides = array<i32>} : memref<8x8x128xf32, #tpu.memory_space<vmem>>, vector<1x8x128xf32>,
    %c8 = arith.constant 8 : index
    %c0_23 = arith.constant 0 : index
    %50 = vector.load %arg6[%c8, %c0_23] : memref<64x384xf32, #tpu.memory_space<vmem>>, vector<8x384xf32>
    %cst_24 = arith.constant dense<0.000000e+00> : vector<8x384xf32>
    %51 = tpu.matmul %46, %14, %cst_24 {dimension_numbers = #tpu.dot_dimension_numbers<[1], [0], [0], [1], [0, 0, 1, 1], [], []>} : vector<8x128xbf16>, vector<128x384xbf16>, vector<8x384xf32> -> vector<8x384xf32>
    %52 = vector.extract_strided_slice %50 {offsets = [0, 0], sizes = [8, 128], strides = [1, 1]} : vector<8x384xf32> to vector<8x128xf32>
    %53 = vector.extract_strided_slice %51 {offsets = [0, 0], sizes = [8, 128], strides = [1, 1]} : vector<8x384xf32> to vector<8x128xf32>
    %54 = arith.addf %52, %53 : vector<8x128xf32>
    %55 = arith.negf %54 : vector<8x128xf32>
    %56 = math.exp %55 : vector<8x128xf32>
    %cst_25 = arith.constant 1.000000e+00 : f32
    %57 = vector.broadcast %cst_25 : f32 to vector<8x128xf32>
    %58 = arith.addf %57, %56 : vector<8x128xf32>
    %59 = arith.divf %57, %58 : vector<8x128xf32>
    %60 = vector.extract_strided_slice %50 {offsets = [0, 128], sizes = [8, 128], strides = [1, 1]} : vector<8x384xf32> to vector<8x128xf32>
    %61 = vector.extract_strided_slice %51 {offsets = [0, 128], sizes = [8, 128], strides = [1, 1]} : vector<8x384xf32> to vector<8x128xf32>
    %62 = arith.addf %60, %61 : vector<8x128xf32>
    %63 = arith.negf %62 : vector<8x128xf32>
    %64 = math.exp %63 : vector<8x128xf32>
    %cst_26 = arith.constant 1.000000e+00 : f32
    %65 = vector.broadcast %cst_26 : f32 to vector<8x128xf32>
    %66 = arith.addf %65, %64 : vector<8x128xf32>
    %67 = arith.divf %65, %66 : vector<8x128xf32>
    %68 = vector.extract_strided_slice %50 {offsets = [0, 256], sizes = [8, 128], strides = [1, 1]} : vector<8x384xf32> to vector<8x128xf32>
    %69 = vector.extract_strided_slice %51 {offsets = [0, 256], sizes = [8, 128], strides = [1, 1]} : vector<8x384xf32> to vector<8x128xf32>
    %70 = vector.broadcast %15 : vector<1x128xf32> to vector<8x128xf32>
    %71 = arith.addf %69, %70 : vector<8x128xf32>
    %72 = arith.mulf %59, %71 : vector<8x128xf32>
    %73 = arith.addf %68, %72 : vector<8x128xf32>
    %74 = math.tanh %73 : vector<8x128xf32>
    %75 = arith.subf %45, %74 : vector<8x128xf32>
    %76 = arith.mulf %67, %75 : vector<8x128xf32>
    %77 = arith.addf %74, %76 : vector<8x128xf32>
    %78 = arith.truncf %77 : vector<8x128xf32> to vector<8x128xbf16>
    %c1 = arith.constant 1 : index
    %c0_27 = arith.constant 0 : index
    %c0_28 = arith.constant 0 : index
    %79 = vector.load %arg5[%c1, %c0_27, %c0_28] : memref<8x8x128xf32, #tpu.memory_space<vmem>>, vector<1x8x128xf32>
    %80 = vector.shape_cast %79 : vector<1x8x128xf32> to vector<8x128xf32>
    %81 = vector.shape_cast %77 : vector<8x128xf32> to vector<1x8x128xf32>
    tpu.vector_store %arg5[%c1, %c0_27, %c0_28], %81 {strides = array<i32>} : memref<8x8x128xf32, #tpu.memory_space<vmem>>, vector<1x8x128xf32>,
    %c16 = arith.constant 16 : index
    %c0_29 = arith.constant 0 : index
    %82 = vector.load %arg6[%c16, %c0_29] : memref<64x384xf32, #tpu.memory_space<vmem>>, vector<8x384xf32>
    %cst_30 = arith.constant dense<0.000000e+00> : vector<8x384xf32>
    %83 = tpu.matmul %78, %14, %cst_30 {dimension_numbers = #tpu.dot_dimension_numbers<[1], [0], [0], [1], [0, 0, 1, 1], [], []>} : vector<8x128xbf16>, vector<128x384xbf16>, vector<8x384xf32> -> vector<8x384xf32>
    %84 = vector.extract_strided_slice %82 {offsets = [0, 0], sizes = [8, 128], strides = [1, 1]} : vector<8x384xf32> to vector<8x128xf32>
    %85 = vector.extract_strided_slice %83 {offsets = [0, 0], sizes = [8, 128], strides = [1, 1]} : vector<8x384xf32> to vector<8x128xf32>
    %86 = arith.addf %84, %85 : vector<8x128xf32>
    %87 = arith.negf %86 : vector<8x128xf32>
    %88 = math.exp %87 : vector<8x128xf32>
    %cst_31 = arith.constant 1.000000e+00 : f32
    %89 = vector.broadcast %cst_31 : f32 to vector<8x128xf32>
    %90 = arith.addf %89, %88 : vector<8x128xf32>
    %91 = arith.divf %89, %90 : vector<8x128xf32>
    %92 = vector.extract_strided_slice %82 {offsets = [0, 128], sizes = [8, 128], strides = [1, 1]} : vector<8x384xf32> to vector<8x128xf32>
    %93 = vector.extract_strided_slice %83 {offsets = [0, 128], sizes = [8, 128], strides = [1, 1]} : vector<8x384xf32> to vector<8x128xf32>
    %94 = arith.addf %92, %93 : vector<8x128xf32>
    %95 = arith.negf %94 : vector<8x128xf32>
    %96 = math.exp %95 : vector<8x128xf32>
    %cst_32 = arith.constant 1.000000e+00 : f32
    %97 = vector.broadcast %cst_32 : f32 to vector<8x128xf32>
    %98 = arith.addf %97, %96 : vector<8x128xf32>
    %99 = arith.divf %97, %98 : vector<8x128xf32>
    %100 = vector.extract_strided_slice %82 {offsets = [0, 256], sizes = [8, 128], strides = [1, 1]} : vector<8x384xf32> to vector<8x128xf32>
    %101 = vector.extract_strided_slice %83 {offsets = [0, 256], sizes = [8, 128], strides = [1, 1]} : vector<8x384xf32> to vector<8x128xf32>
    %102 = vector.broadcast %15 : vector<1x128xf32> to vector<8x128xf32>
    %103 = arith.addf %101, %102 : vector<8x128xf32>
    %104 = arith.mulf %91, %103 : vector<8x128xf32>
    %105 = arith.addf %100, %104 : vector<8x128xf32>
    %106 = math.tanh %105 : vector<8x128xf32>
    %107 = arith.subf %77, %106 : vector<8x128xf32>
    %108 = arith.mulf %99, %107 : vector<8x128xf32>
    %109 = arith.addf %106, %108 : vector<8x128xf32>
    %110 = arith.truncf %109 : vector<8x128xf32> to vector<8x128xbf16>
    %c2 = arith.constant 2 : index
    %c0_33 = arith.constant 0 : index
    %c0_34 = arith.constant 0 : index
    %111 = vector.load %arg5[%c2, %c0_33, %c0_34] : memref<8x8x128xf32, #tpu.memory_space<vmem>>, vector<1x8x128xf32>
    %112 = vector.shape_cast %111 : vector<1x8x128xf32> to vector<8x128xf32>
    %113 = vector.shape_cast %109 : vector<8x128xf32> to vector<1x8x128xf32>
    tpu.vector_store %arg5[%c2, %c0_33, %c0_34], %113 {strides = array<i32>} : memref<8x8x128xf32, #tpu.memory_space<vmem>>, vector<1x8x128xf32>,
    %c24 = arith.constant 24 : index
    %c0_35 = arith.constant 0 : index
    %114 = vector.load %arg6[%c24, %c0_35] : memref<64x384xf32, #tpu.memory_space<vmem>>, vector<8x384xf32>
    %cst_36 = arith.constant dense<0.000000e+00> : vector<8x384xf32>
    %115 = tpu.matmul %110, %14, %cst_36 {dimension_numbers = #tpu.dot_dimension_numbers<[1], [0], [0], [1], [0, 0, 1, 1], [], []>} : vector<8x128xbf16>, vector<128x384xbf16>, vector<8x384xf32> -> vector<8x384xf32>
    %116 = vector.extract_strided_slice %114 {offsets = [0, 0], sizes = [8, 128], strides = [1, 1]} : vector<8x384xf32> to vector<8x128xf32>
    %117 = vector.extract_strided_slice %115 {offsets = [0, 0], sizes = [8, 128], strides = [1, 1]} : vector<8x384xf32> to vector<8x128xf32>
    %118 = arith.addf %116, %117 : vector<8x128xf32>
    %119 = arith.negf %118 : vector<8x128xf32>
    %120 = math.exp %119 : vector<8x128xf32>
    %cst_37 = arith.constant 1.000000e+00 : f32
    %121 = vector.broadcast %cst_37 : f32 to vector<8x128xf32>
    %122 = arith.addf %121, %120 : vector<8x128xf32>
    %123 = arith.divf %121, %122 : vector<8x128xf32>
    %124 = vector.extract_strided_slice %114 {offsets = [0, 128], sizes = [8, 128], strides = [1, 1]} : vector<8x384xf32> to vector<8x128xf32>
    %125 = vector.extract_strided_slice %115 {offsets = [0, 128], sizes = [8, 128], strides = [1, 1]} : vector<8x384xf32> to vector<8x128xf32>
    %126 = arith.addf %124, %125 : vector<8x128xf32>
    %127 = arith.negf %126 : vector<8x128xf32>
    %128 = math.exp %127 : vector<8x128xf32>
    %cst_38 = arith.constant 1.000000e+00 : f32
    %129 = vector.broadcast %cst_38 : f32 to vector<8x128xf32>
    %130 = arith.addf %129, %128 : vector<8x128xf32>
    %131 = arith.divf %129, %130 : vector<8x128xf32>
    %132 = vector.extract_strided_slice %114 {offsets = [0, 256], sizes = [8, 128], strides = [1, 1]} : vector<8x384xf32> to vector<8x128xf32>
    %133 = vector.extract_strided_slice %115 {offsets = [0, 256], sizes = [8, 128], strides = [1, 1]} : vector<8x384xf32> to vector<8x128xf32>
    %134 = vector.broadcast %15 : vector<1x128xf32> to vector<8x128xf32>
    %135 = arith.addf %133, %134 : vector<8x128xf32>
    %136 = arith.mulf %123, %135 : vector<8x128xf32>
    %137 = arith.addf %132, %136 : vector<8x128xf32>
    %138 = math.tanh %137 : vector<8x128xf32>
    %139 = arith.subf %109, %138 : vector<8x128xf32>
    %140 = arith.mulf %131, %139 : vector<8x128xf32>
    %141 = arith.addf %138, %140 : vector<8x128xf32>
    %142 = arith.truncf %141 : vector<8x128xf32> to vector<8x128xbf16>
    %c3 = arith.constant 3 : index
    %c0_39 = arith.constant 0 : index
    %c0_40 = arith.constant 0 : index
    %143 = vector.load %arg5[%c3, %c0_39, %c0_40] : memref<8x8x128xf32, #tpu.memory_space<vmem>>, vector<1x8x128xf32>
    %144 = vector.shape_cast %143 : vector<1x8x128xf32> to vector<8x128xf32>
    %145 = vector.shape_cast %141 : vector<8x128xf32> to vector<1x8x128xf32>
    tpu.vector_store %arg5[%c3, %c0_39, %c0_40], %145 {strides = array<i32>} : memref<8x8x128xf32, #tpu.memory_space<vmem>>, vector<1x8x128xf32>,
    %c32 = arith.constant 32 : index
    %c0_41 = arith.constant 0 : index
    %146 = vector.load %arg6[%c32, %c0_41] : memref<64x384xf32, #tpu.memory_space<vmem>>, vector<8x384xf32>
    %cst_42 = arith.constant dense<0.000000e+00> : vector<8x384xf32>
    %147 = tpu.matmul %142, %14, %cst_42 {dimension_numbers = #tpu.dot_dimension_numbers<[1], [0], [0], [1], [0, 0, 1, 1], [], []>} : vector<8x128xbf16>, vector<128x384xbf16>, vector<8x384xf32> -> vector<8x384xf32>
    %148 = vector.extract_strided_slice %146 {offsets = [0, 0], sizes = [8, 128], strides = [1, 1]} : vector<8x384xf32> to vector<8x128xf32>
    %149 = vector.extract_strided_slice %147 {offsets = [0, 0], sizes = [8, 128], strides = [1, 1]} : vector<8x384xf32> to vector<8x128xf32>
    %150 = arith.addf %148, %149 : vector<8x128xf32>
    %151 = arith.negf %150 : vector<8x128xf32>
    %152 = math.exp %151 : vector<8x128xf32>
    %cst_43 = arith.constant 1.000000e+00 : f32
    %153 = vector.broadcast %cst_43 : f32 to vector<8x128xf32>
    %154 = arith.addf %153, %152 : vector<8x128xf32>
    %155 = arith.divf %153, %154 : vector<8x128xf32>
    %156 = vector.extract_strided_slice %146 {offsets = [0, 128], sizes = [8, 128], strides = [1, 1]} : vector<8x384xf32> to vector<8x128xf32>
    %157 = vector.extract_strided_slice %147 {offsets = [0, 128], sizes = [8, 128], strides = [1, 1]} : vector<8x384xf32> to vector<8x128xf32>
    %158 = arith.addf %156, %157 : vector<8x128xf32>
    %159 = arith.negf %158 : vector<8x128xf32>
    %160 = math.exp %159 : vector<8x128xf32>
    %cst_44 = arith.constant 1.000000e+00 : f32
    %161 = vector.broadcast %cst_44 : f32 to vector<8x128xf32>
    %162 = arith.addf %161, %160 : vector<8x128xf32>
    %163 = arith.divf %161, %162 : vector<8x128xf32>
    %164 = vector.extract_strided_slice %146 {offsets = [0, 256], sizes = [8, 128], strides = [1, 1]} : vector<8x384xf32> to vector<8x128xf32>
    %165 = vector.extract_strided_slice %147 {offsets = [0, 256], sizes = [8, 128], strides = [1, 1]} : vector<8x384xf32> to vector<8x128xf32>
    %166 = vector.broadcast %15 : vector<1x128xf32> to vector<8x128xf32>
    %167 = arith.addf %165, %166 : vector<8x128xf32>
    %168 = arith.mulf %155, %167 : vector<8x128xf32>
    %169 = arith.addf %164, %168 : vector<8x128xf32>
    %170 = math.tanh %169 : vector<8x128xf32>
    %171 = arith.subf %141, %170 : vector<8x128xf32>
    %172 = arith.mulf %163, %171 : vector<8x128xf32>
    %173 = arith.addf %170, %172 : vector<8x128xf32>
    %174 = arith.truncf %173 : vector<8x128xf32> to vector<8x128xbf16>
    %c4 = arith.constant 4 : index
    %c0_45 = arith.constant 0 : index
    %c0_46 = arith.constant 0 : index
    %175 = vector.load %arg5[%c4, %c0_45, %c0_46] : memref<8x8x128xf32, #tpu.memory_space<vmem>>, vector<1x8x128xf32>
    %176 = vector.shape_cast %175 : vector<1x8x128xf32> to vector<8x128xf32>
    %177 = vector.shape_cast %173 : vector<8x128xf32> to vector<1x8x128xf32>
    tpu.vector_store %arg5[%c4, %c0_45, %c0_46], %177 {strides = array<i32>} : memref<8x8x128xf32, #tpu.memory_space<vmem>>, vector<1x8x128xf32>,
    %c40 = arith.constant 40 : index
    %c0_47 = arith.constant 0 : index
    %178 = vector.load %arg6[%c40, %c0_47] : memref<64x384xf32, #tpu.memory_space<vmem>>, vector<8x384xf32>
    %cst_48 = arith.constant dense<0.000000e+00> : vector<8x384xf32>
    %179 = tpu.matmul %174, %14, %cst_48 {dimension_numbers = #tpu.dot_dimension_numbers<[1], [0], [0], [1], [0, 0, 1, 1], [], []>} : vector<8x128xbf16>, vector<128x384xbf16>, vector<8x384xf32> -> vector<8x384xf32>
    %180 = vector.extract_strided_slice %178 {offsets = [0, 0], sizes = [8, 128], strides = [1, 1]} : vector<8x384xf32> to vector<8x128xf32>
    %181 = vector.extract_strided_slice %179 {offsets = [0, 0], sizes = [8, 128], strides = [1, 1]} : vector<8x384xf32> to vector<8x128xf32>
    %182 = arith.addf %180, %181 : vector<8x128xf32>
    %183 = arith.negf %182 : vector<8x128xf32>
    %184 = math.exp %183 : vector<8x128xf32>
    %cst_49 = arith.constant 1.000000e+00 : f32
    %185 = vector.broadcast %cst_49 : f32 to vector<8x128xf32>
    %186 = arith.addf %185, %184 : vector<8x128xf32>
    %187 = arith.divf %185, %186 : vector<8x128xf32>
    %188 = vector.extract_strided_slice %178 {offsets = [0, 128], sizes = [8, 128], strides = [1, 1]} : vector<8x384xf32> to vector<8x128xf32>
    %189 = vector.extract_strided_slice %179 {offsets = [0, 128], sizes = [8, 128], strides = [1, 1]} : vector<8x384xf32> to vector<8x128xf32>
    %190 = arith.addf %188, %189 : vector<8x128xf32>
    %191 = arith.negf %190 : vector<8x128xf32>
    %192 = math.exp %191 : vector<8x128xf32>
    %cst_50 = arith.constant 1.000000e+00 : f32
    %193 = vector.broadcast %cst_50 : f32 to vector<8x128xf32>
    %194 = arith.addf %193, %192 : vector<8x128xf32>
    %195 = arith.divf %193, %194 : vector<8x128xf32>
    %196 = vector.extract_strided_slice %178 {offsets = [0, 256], sizes = [8, 128], strides = [1, 1]} : vector<8x384xf32> to vector<8x128xf32>
    %197 = vector.extract_strided_slice %179 {offsets = [0, 256], sizes = [8, 128], strides = [1, 1]} : vector<8x384xf32> to vector<8x128xf32>
    %198 = vector.broadcast %15 : vector<1x128xf32> to vector<8x128xf32>
    %199 = arith.addf %197, %198 : vector<8x128xf32>
    %200 = arith.mulf %187, %199 : vector<8x128xf32>
    %201 = arith.addf %196, %200 : vector<8x128xf32>
    %202 = math.tanh %201 : vector<8x128xf32>
    %203 = arith.subf %173, %202 : vector<8x128xf32>
    %204 = arith.mulf %195, %203 : vector<8x128xf32>
    %205 = arith.addf %202, %204 : vector<8x128xf32>
    %206 = arith.truncf %205 : vector<8x128xf32> to vector<8x128xbf16>
    %c5 = arith.constant 5 : index
    %c0_51 = arith.constant 0 : index
    %c0_52 = arith.constant 0 : index
    %207 = vector.load %arg5[%c5, %c0_51, %c0_52] : memref<8x8x128xf32, #tpu.memory_space<vmem>>, vector<1x8x128xf32>
    %208 = vector.shape_cast %207 : vector<1x8x128xf32> to vector<8x128xf32>
    %209 = vector.shape_cast %205 : vector<8x128xf32> to vector<1x8x128xf32>
    tpu.vector_store %arg5[%c5, %c0_51, %c0_52], %209 {strides = array<i32>} : memref<8x8x128xf32, #tpu.memory_space<vmem>>, vector<1x8x128xf32>,
    %c48 = arith.constant 48 : index
    %c0_53 = arith.constant 0 : index
    %210 = vector.load %arg6[%c48, %c0_53] : memref<64x384xf32, #tpu.memory_space<vmem>>, vector<8x384xf32>
    %cst_54 = arith.constant dense<0.000000e+00> : vector<8x384xf32>
    %211 = tpu.matmul %206, %14, %cst_54 {dimension_numbers = #tpu.dot_dimension_numbers<[1], [0], [0], [1], [0, 0, 1, 1], [], []>} : vector<8x128xbf16>, vector<128x384xbf16>, vector<8x384xf32> -> vector<8x384xf32>
    %212 = vector.extract_strided_slice %210 {offsets = [0, 0], sizes = [8, 128], strides = [1, 1]} : vector<8x384xf32> to vector<8x128xf32>
    %213 = vector.extract_strided_slice %211 {offsets = [0, 0], sizes = [8, 128], strides = [1, 1]} : vector<8x384xf32> to vector<8x128xf32>
    %214 = arith.addf %212, %213 : vector<8x128xf32>
    %215 = arith.negf %214 : vector<8x128xf32>
    %216 = math.exp %215 : vector<8x128xf32>
    %cst_55 = arith.constant 1.000000e+00 : f32
    %217 = vector.broadcast %cst_55 : f32 to vector<8x128xf32>
    %218 = arith.addf %217, %216 : vector<8x128xf32>
    %219 = arith.divf %217, %218 : vector<8x128xf32>
    %220 = vector.extract_strided_slice %210 {offsets = [0, 128], sizes = [8, 128], strides = [1, 1]} : vector<8x384xf32> to vector<8x128xf32>
    %221 = vector.extract_strided_slice %211 {offsets = [0, 128], sizes = [8, 128], strides = [1, 1]} : vector<8x384xf32> to vector<8x128xf32>
    %222 = arith.addf %220, %221 : vector<8x128xf32>
    %223 = arith.negf %222 : vector<8x128xf32>
    %224 = math.exp %223 : vector<8x128xf32>
    %cst_56 = arith.constant 1.000000e+00 : f32
    %225 = vector.broadcast %cst_56 : f32 to vector<8x128xf32>
    %226 = arith.addf %225, %224 : vector<8x128xf32>
    %227 = arith.divf %225, %226 : vector<8x128xf32>
    %228 = vector.extract_strided_slice %210 {offsets = [0, 256], sizes = [8, 128], strides = [1, 1]} : vector<8x384xf32> to vector<8x128xf32>
    %229 = vector.extract_strided_slice %211 {offsets = [0, 256], sizes = [8, 128], strides = [1, 1]} : vector<8x384xf32> to vector<8x128xf32>
    %230 = vector.broadcast %15 : vector<1x128xf32> to vector<8x128xf32>
    %231 = arith.addf %229, %230 : vector<8x128xf32>
    %232 = arith.mulf %219, %231 : vector<8x128xf32>
    %233 = arith.addf %228, %232 : vector<8x128xf32>
    %234 = math.tanh %233 : vector<8x128xf32>
    %235 = arith.subf %205, %234 : vector<8x128xf32>
    %236 = arith.mulf %227, %235 : vector<8x128xf32>
    %237 = arith.addf %234, %236 : vector<8x128xf32>
    %238 = arith.truncf %237 : vector<8x128xf32> to vector<8x128xbf16>
    %c6 = arith.constant 6 : index
    %c0_57 = arith.constant 0 : index
    %c0_58 = arith.constant 0 : index
    %239 = vector.load %arg5[%c6, %c0_57, %c0_58] : memref<8x8x128xf32, #tpu.memory_space<vmem>>, vector<1x8x128xf32>
    %240 = vector.shape_cast %239 : vector<1x8x128xf32> to vector<8x128xf32>
    %241 = vector.shape_cast %237 : vector<8x128xf32> to vector<1x8x128xf32>
    tpu.vector_store %arg5[%c6, %c0_57, %c0_58], %241 {strides = array<i32>} : memref<8x8x128xf32, #tpu.memory_space<vmem>>, vector<1x8x128xf32>,
    %c56 = arith.constant 56 : index
    %c0_59 = arith.constant 0 : index
    %242 = vector.load %arg6[%c56, %c0_59] : memref<64x384xf32, #tpu.memory_space<vmem>>, vector<8x384xf32>
    %cst_60 = arith.constant dense<0.000000e+00> : vector<8x384xf32>
    %243 = tpu.matmul %238, %14, %cst_60 {dimension_numbers = #tpu.dot_dimension_numbers<[1], [0], [0], [1], [0, 0, 1, 1], [], []>} : vector<8x128xbf16>, vector<128x384xbf16>, vector<8x384xf32> -> vector<8x384xf32>
    %244 = vector.extract_strided_slice %242 {offsets = [0, 0], sizes = [8, 128], strides = [1, 1]} : vector<8x384xf32> to vector<8x128xf32>
    %245 = vector.extract_strided_slice %243 {offsets = [0, 0], sizes = [8, 128], strides = [1, 1]} : vector<8x384xf32> to vector<8x128xf32>
    %246 = arith.addf %244, %245 : vector<8x128xf32>
    %247 = arith.negf %246 : vector<8x128xf32>
    %248 = math.exp %247 : vector<8x128xf32>
    %cst_61 = arith.constant 1.000000e+00 : f32
    %249 = vector.broadcast %cst_61 : f32 to vector<8x128xf32>
    %250 = arith.addf %249, %248 : vector<8x128xf32>
    %251 = arith.divf %249, %250 : vector<8x128xf32>
    %252 = vector.extract_strided_slice %242 {offsets = [0, 128], sizes = [8, 128], strides = [1, 1]} : vector<8x384xf32> to vector<8x128xf32>
    %253 = vector.extract_strided_slice %243 {offsets = [0, 128], sizes = [8, 128], strides = [1, 1]} : vector<8x384xf32> to vector<8x128xf32>
    %254 = arith.addf %252, %253 : vector<8x128xf32>
    %255 = arith.negf %254 : vector<8x128xf32>
    %256 = math.exp %255 : vector<8x128xf32>
    %cst_62 = arith.constant 1.000000e+00 : f32
    %257 = vector.broadcast %cst_62 : f32 to vector<8x128xf32>
    %258 = arith.addf %257, %256 : vector<8x128xf32>
    %259 = arith.divf %257, %258 : vector<8x128xf32>
    %260 = vector.extract_strided_slice %242 {offsets = [0, 256], sizes = [8, 128], strides = [1, 1]} : vector<8x384xf32> to vector<8x128xf32>
    %261 = vector.extract_strided_slice %243 {offsets = [0, 256], sizes = [8, 128], strides = [1, 1]} : vector<8x384xf32> to vector<8x128xf32>
    %262 = vector.broadcast %15 : vector<1x128xf32> to vector<8x128xf32>
    %263 = arith.addf %261, %262 : vector<8x128xf32>
    %264 = arith.mulf %251, %263 : vector<8x128xf32>
    %265 = arith.addf %260, %264 : vector<8x128xf32>
    %266 = math.tanh %265 : vector<8x128xf32>
    %267 = arith.subf %237, %266 : vector<8x128xf32>
    %268 = arith.mulf %259, %267 : vector<8x128xf32>
    %269 = arith.addf %266, %268 : vector<8x128xf32>
    %c7 = arith.constant 7 : index
    %c0_63 = arith.constant 0 : index
    %c0_64 = arith.constant 0 : index
    %270 = vector.load %arg5[%c7, %c0_63, %c0_64] : memref<8x8x128xf32, #tpu.memory_space<vmem>>, vector<1x8x128xf32>
    %271 = vector.shape_cast %270 : vector<1x8x128xf32> to vector<8x128xf32>
    %272 = vector.shape_cast %269 : vector<8x128xf32> to vector<1x8x128xf32>
    tpu.vector_store %arg5[%c7, %c0_63, %c0_64], %272 {strides = array<i32>} : memref<8x8x128xf32, #tpu.memory_space<vmem>>, vector<1x8x128xf32>,
    return
  }
}

</mosaic_0001>

<bundles_post_ra>
// kernel: tpu_custom_call.1
= control target key start
LH: loop header
LB: loop body
LE: loop exit
PB: predicated region body
PF: predicated region fallthrough
CT: control target
= control target key end

     0   :  { %10 = vsyncpa [#allocation4], 0  ;;  %s2654_s0 = inlined_call_operand.vmem [shape: s32[64,1], index: 0, kind: input, shape index: {}]   ;;  %s2655_s1 = inlined_call_operand.hbm [shape: bf16[128,384], index: 1, kind: input, shape index: {}]   ;;  %s2656_s2 = inlined_call_operand.hbm [shape: bf16[128,384], index: 2, kind: input, shape index: {}]   ;;  %s2657_s3 = inlined_call_operand.vmem [shape: f32[1,384], index: 3, kind: input, shape index: {}]   ;;  %s2658_s4 = inlined_call_operand.vmem [shape: f32[1,128], index: 4, kind: input, shape index: {}]   ;;  %s2659_s5 = inlined_call_operand.hbm [shape: f32[8,8,128], index: 5, kind: output, shape index: {}]  }
   0x1   :  { %11 = vsyncpa [#allocation7], 0 }
   0x2   :  { %12 = vsyncpa [#allocation5], 0  ;;  %s2086_s18 = smov [#allocation3]   ;;  %s2014_s22 = scalar_lea.hbm %s2655_s1, 3072 }
   0x3   :  { %s20_s19 = sshll.u32 %s2086_s18, 4  ;;  %p2015_p0 = scmp.ne.s32.totalorder %s2655_s1, %s2014_s22  ;;  %s21_s19 = int_to_ptr.vmem [resolvable:$true] %s20_s19 }
   0x4   :  { %p2018_p1 = scmp.lt.u32.totalorder %s2014_s22, %s2655_s1 }
   0x6   :  { %p2020_p2 = pnand %p2018_p1, %p2015_p0 }
   0x8   :  { %2023 = shalt.err (!%p2020_p2)
}
   0x9   :  { %s2024_s27 = scalar_lea.vmem %s21_s19, 3072  ;;  %p2029_p4 = scmp.lt.s32.totalorder %s21_s19, %s21_s19 }
   0xa   :  { %p2025_p3 = scmp.ne.s32.totalorder %s21_s19, %s2024_s27  ;;  %p2030_p5 = scmp.lt.s32.totalorder %s2024_s27, %s2024_s27 }
   0xc   :  { %p2031_p6 = por %p2030_p5, %p2029_p4 }
   0xe   :  { %p2032_p7 = pnand %p2031_p6, %p2025_p3 }
  0x10   :  { %2035 = shalt.err (!%p2032_p7)
}
  0x11   :  { %s2087_s28 = smov 192   ;;  %s2088_s29 = smov 12  }
  0x12   :  { %26 = dma.hbm_to_vmem [thread:$0]  %s2655_s1, 3072, %s21_s19, [#allocation4], %s2087_s28, %s2087_s28, %s2088_s29  }
  0x13   :  { %s2089_s7 = smov [#allocation6]   ;;  %s2036_s11 = scalar_lea.hbm %s2656_s2, 3072 }
  0x14   :  { %s32_s8 = sshll.u32 %s2089_s7, 4  ;;  %p2037_p8 = scmp.ne.s32.totalorder %s2656_s2, %s2036_s11  ;;  %s33_s8 = int_to_ptr.vmem [resolvable:$true] %s32_s8 }
  0x15   :  { %p2040_p9 = scmp.lt.u32.totalorder %s2036_s11, %s2656_s2 }
  0x17   :  { %p2042_p10 = pnand %p2040_p9, %p2037_p8 }
  0x19   :  { %2045 = shalt.err (!%p2042_p10)
}
  0x1a   :  { %s2046_s16 = scalar_lea.vmem %s33_s8, 3072  ;;  %p2051_p12 = scmp.lt.s32.totalorder %s33_s8, %s33_s8 }
  0x1b   :  { %p2047_p11 = scmp.ne.s32.totalorder %s33_s8, %s2046_s16  ;;  %p2052_p13 = scmp.lt.s32.totalorder %s2046_s16, %s2046_s16 }
  0x1d   :  { %p2053_p0 = por %p2052_p13, %p2051_p12 }
  0x1f   :  { %p2054_p1 = pnand %p2053_p0, %p2047_p11 }
  0x21   :  { %2057 = shalt.err (!%p2054_p1)
}
  0x22   :  { %38 = dma.hbm_to_vmem [thread:$0]  %s2656_s2, 3072, %s33_s8, [#allocation7], %s2087_s28, %s2087_s28, %s2088_s29  }
  0x23   :  { %2080 = dma.done.wait [#allocation4], 3072  }
  0x24   :  { %2081 = vsyncadd [#allocation4], 4294964224 }
  0x25   :  { %2082 = dma.done.wait [#allocation7], 3072  }
  0x26   :  { %2083 = vsyncadd [#allocation7], 4294964224  ;;  %v2660_v0 = vmov 0   ;;  %v52_v1 = vld [vmem:[%s2654_s0 + $0x10] sm:$0xff]  ;;  %v50_v2 = vld [vmem:[%s2654_s0] sm:$0xff]  ;;  %v2662_v34 = vmov 0.0   ;;  %v58_v35 = vlaneseq }
  0x27   :  { %1851 = vset.pattern.permute.xlu1 %v2660_v0  ;;  %1850 = vset.pattern.permute.xlu0 %v2660_v0  ;;  %v53_v3 = vld [vmem:[%s2654_s0 + $0x18] sm:$0xff]  ;;  %v51_v4 = vld [vmem:[%s2654_s0 + $0x8] sm:$0xff]  ;;  %v1852_v5 = vld [vmem:[#allocation3 + $0x4] ss:$12 sps:$4 sm:$0xff]   ;;  %v2092_v45 = vmov 1.0|1.0  }
  0x28   :  { %313 = vmatprep.mubr.bf16.mxu0 %v2660_v0  ;;  %67 = vperm.xlu1 %1851, %v52_v1   ;;  %v1854_v6 = vld [vmem:[#allocation3] ss:$12 sps:$4 sm:$0xff]   ;;  %v1855_v9 = vld [vmem:[#allocation3 + $0x8] ss:$12 sps:$4 sm:$0xff]   ;;  %v1858_v11 = vld [vmem:[#allocation3 + $0x18] ss:$12 sps:$4 sm:$0xff]  }
  0x29   :  { %61 = vperm.xlu0 %1850, %v50_v2   ;;  %v55_v7 = vld [vmem:[%s2654_s0 + $0x28] sm:$0xff]  ;;  %v54_v8 = vld [vmem:[%s2654_s0 + $0x20] sm:$0xff]  ;;  %281 = vmatprep.subr.bf16.mxu0 %v1852_v5  ;;  %v57_v13 = vld [vmem:[%s2654_s0 + $0x38] sm:$0xff]  ;;  %v59_v38 = vand.u32 127, %v58_v35  ;;  %vm2093_vm12 = vmmov 0  }
  0x2a   :  { %v1856_v10 = vld [vmem:[#allocation3 + $0x1c] ss:$12 sps:$4 sm:$0xff]   ;;  %1655 = vmatprep.subr.bf16.mxu1 %v1855_v9  ;;  %282 = vmatpush1.bf16.msra.mxu0 %v1854_v6  ;;  %v1859_v12 = vld [vmem:[#allocation3 + $0x20] ss:$12 sps:$4 sm:$0xff]   ;;  %v1863_v15 = vld [vmem:[#allocation3 + $0x38] ss:$12 sps:$4 sm:$0xff]  }
  0x2b   :  { %1656 = vmatpush3.bf16.msra.mxu1 %v1855_v9  ;;  %283 = vmatprep.subr.bf16.mxu0 %v1856_v10  ;;  %v1860_v14 = vld [vmem:[#allocation3 + $0x34] ss:$12 sps:$4 sm:$0xff]   ;;  %v1862_v17 = vld [vmem:[#allocation3 + $0x30] ss:$12 sps:$4 sm:$0xff]   ;;  %v1864_v18 = vld [vmem:[#allocation3 + $0x4c] ss:$12 sps:$4 sm:$0xff]  }
  0x2c   :  { %70 = vperm.xlu1 %1851, %v53_v3   ;;  %v56_v16 = vld [vmem:[%s2654_s0 + $0x30] sm:$0xff]  ;;  %1657 = vmatprep.subr.bf16.mxu1 %v1859_v12  ;;  %v1870_v23 = vld [vmem:[#allocation3 + $0x60] ss:$12 sps:$4 sm:$0xff]   ;;  %v1872_v24 = vld [vmem:[#allocation3 + $0x7c] ss:$12 sps:$4 sm:$0xff]   ;;  %v139_v9 = vshrl.u32 %v58_v35, 7 }
  0x2d   :  { %64 = vperm.xlu0 %1850, %v51_v4   ;;  %v1867_v19 = vld [vmem:[#allocation3 + $0x50] ss:$12 sps:$4 sm:$0xff]   ;;  %v1866_v20 = vld [vmem:[#allocation3 + $0x48] ss:$12 sps:$4 sm:$0xff]   ;;  %v1875_v25 = vld [vmem:[#allocation3 + $0x80] ss:$12 sps:$4 sm:$0xff]  }
  0x2e   :  { %284 = vmatpush1.bf16.msra.mxu0 %v1858_v11  ;;  %v1868_v21 = vld [vmem:[#allocation3 + $0x64] ss:$12 sps:$4 sm:$0xff]   ;;  %v1871_v22 = vld [vmem:[#allocation3 + $0x68] ss:$12 sps:$4 sm:$0xff]   ;;  %v1880_v30 = vld [vmem:[#allocation3 + $0xac] ss:$12 sps:$4 sm:$0xff]  }
  0x2f   :  { %1658 = vmatpush3.bf16.msra.mxu1 %v1859_v12  ;;  %285 = vmatprep.subr.bf16.mxu0 %v1860_v14  ;;  %v1874_v26 = vld [vmem:[#allocation3 + $0x78] ss:$12 sps:$4 sm:$0xff]   ;;  %v1876_v27 = vld [vmem:[#allocation3 + $0x94] ss:$12 sps:$4 sm:$0xff]   ;;  %v1878_v29 = vld [vmem:[#allocation3 + $0x90] ss:$12 sps:$4 sm:$0xff]  }
  0x30   :  { %76 = vperm.xlu1 %1851, %v55_v7   ;;  %1659 = vmatprep.subr.bf16.mxu1 %v1863_v15  ;;  %v1879_v28 = vld [vmem:[#allocation3 + $0x98] ss:$12 sps:$4 sm:$0xff]   ;;  %v1883_v31 = vld [vmem:[#allocation3 + $0xb0] ss:$12 sps:$4 sm:$0xff]   ;;  %v1882_v32 = vld [vmem:[#allocation3 + $0xa8] ss:$12 sps:$4 sm:$0xff]  }
  0x31   :  { %73 = vperm.xlu0 %1850, %v54_v8   ;;  %v2178_v33 = vld [vmem:[#allocation6 + $0x4] ss:$12 sps:$4 sm:$0xff]   ;;  %v2183_v41 = vld [vmem:[#allocation6] ss:$12 sps:$4 sm:$0xff]   ;;  %v2189_v43 = vld [vmem:[#allocation6 + $0x1c] ss:$12 sps:$4 sm:$0xff]  }
  0x32   :  { %286 = vmatpush1.bf16.msra.mxu0 %v1862_v17  ;;  %v2191_v44 = vld [vmem:[#allocation6 + $0x8] ss:$12 sps:$4 sm:$0xff]   ;;  %v2199_v48 = vld [vmem:[#allocation6 + $0x18] ss:$12 sps:$4 sm:$0xff]   ;;  %v2213_v51 = vld [vmem:[#allocation6 + $0x20] ss:$12 sps:$4 sm:$0xff]  }
  0x33   :  { %1660 = vmatpush3.bf16.msra.mxu1 %v1863_v15  ;;  %287 = vmatprep.subr.bf16.mxu0 %v1864_v18  ;;  %v2207_v50 = vld [vmem:[#allocation6 + $0x34] ss:$12 sps:$4 sm:$0xff]   ;;  %v2217_v54 = vld [vmem:[#allocation6 + $0x30] ss:$12 sps:$4 sm:$0xff]   ;;  %v2224_v56 = vld [vmem:[#allocation6 + $0x4c] ss:$12 sps:$4 sm:$0xff]  }
  0x34   :  { %82 = vperm.xlu1 %1851, %v57_v13   ;;  %1661 = vmatprep.subr.bf16.mxu1 %v1867_v19  ;;  %v2227_v57 = vld [vmem:[#allocation6 + $0x38] ss:$12 sps:$4 sm:$0xff]   ;;  %v2237_v58 = vld [vmem:[#allocation6 + $0x48] ss:$12 sps:$4 sm:$0xff]   ;;  %v2244_v60 = vld [vmem:[#allocation6 + $0x50] ss:$12 sps:$4 sm:$0xff]  }
  0x35   :  { %79 = vperm.xlu0 %1850, %v56_v16   ;;  %v2241_v59 = vld [vmem:[#allocation6 + $0x64] ss:$12 sps:$4 sm:$0xff]   ;;  %v2250_v61 = vld [vmem:[#allocation6 + $0x60] ss:$12 sps:$4 sm:$0xff]   ;;  %v2253_v62 = vld [vmem:[#allocation6 + $0x7c] ss:$12 sps:$4 sm:$0xff]  }
  0x36   :  { %288 = vmatpush1.bf16.msra.mxu0 %v1866_v20  ;;  %v2256_v63 = vld [vmem:[#allocation6 + $0x68] ss:$12 sps:$4 sm:$0xff]   ;;  %v2263_v1 = vld [vmem:[#allocation6 + $0x78] ss:$12 sps:$4 sm:$0xff]   ;;  %v2270_v3 = vld [vmem:[#allocation6 + $0x80] ss:$12 sps:$4 sm:$0xff]  }
  0x37   :  { %1662 = vmatpush3.bf16.msra.mxu1 %v1867_v19  ;;  %289 = vmatprep.subr.bf16.mxu0 %v1868_v21  ;;  %v2267_v2 = vld [vmem:[#allocation6 + $0x94] ss:$12 sps:$4 sm:$0xff]   ;;  %v2274_v4 = vld [vmem:[#allocation6 + $0x90] ss:$12 sps:$4 sm:$0xff]   ;;  %v2277_v5 = vld [vmem:[#allocation6 + $0xac] ss:$12 sps:$4 sm:$0xff]  }
  0x38   :  { %1663 = vmatprep.subr.bf16.mxu1 %v1871_v22  ;;  %v2280_v6 = vld [vmem:[#allocation6 + $0x98] ss:$12 sps:$4 sm:$0xff]   ;;  %v2287_v7 = vld [vmem:[#allocation6 + $0xa8] ss:$12 sps:$4 sm:$0xff]   ;;  %v2292_v8 = vld [vmem:[#allocation6 + $0xb0] ss:$12 sps:$4 sm:$0xff]  }
  0x39   :  { %v140_v10 = vsub.s32 0, %v139_v9  ;;  %v136_v11 = vld [vmem:[%s2657_s3] sm:$0x7]  ;;  %v144_v12 = vsub.s32 1, %v139_v9  ;;  %v148_v13 = vsub.s32 2, %v139_v9 }
  0x3a   :  { %290 = vmatpush1.bf16.msra.mxu0 %v1870_v23 }
  0x3b   :  { %1664 = vmatpush3.bf16.msra.mxu1 %v1871_v22  ;;  %291 = vmatprep.subr.bf16.mxu0 %v1872_v24  ;;  %v141_v14 = vrot.slane %v136_v11, %v140_v10  ;;  %v145_v15 = vrot.slane %v136_v11, %v144_v12  ;;  %v149_v16 = vrot.slane %v136_v11, %v148_v13 }
  0x3c   :  { %1665 = vmatprep.subr.bf16.mxu1 %v1875_v25 }
  0x3e   :  { %292 = vmatpush1.bf16.msra.mxu0 %v1874_v26 }
  0x3f   :  { %1666 = vmatpush3.bf16.msra.mxu1 %v1875_v25  ;;  %293 = vmatprep.subr.bf16.mxu0 %v1876_v27 }
  0x40   :  { %1667 = vmatprep.subr.bf16.mxu1 %v1879_v28 }
  0x42   :  { %294 = vmatpush1.bf16.msra.mxu0 %v1878_v29 }
  0x43   :  { %1668 = vmatpush3.bf16.msra.mxu1 %v1879_v28  ;;  %295 = vmatprep.subr.bf16.mxu0 %v1880_v30 }
  0x44   :  { %1669 = vmatprep.subr.bf16.mxu1 %v1883_v31 }
  0x46   :  { %296 = vmatpush1.bf16.msra.mxu0 %v1882_v32 }
  0x47   :  { %1670 = vmatpush3.bf16.msra.mxu1 %v1883_v31  ;;  %607 = vmatprep.subr.bf16.mxu0 %v2178_v33 }
  0x48   :  { %1679 = vmatprep.subr.bf16.mxu1 %v2662_v34 }
  0xa7   :  { %v68_v36 = vpop.permute.xlu1 %67 }
  0xa8   :  { %v62_v37 = vpop.permute.xlu0 %61  ;;  %vm86_vm0 = vcmp.eq.s32.totalorder %v59_v38, %v68_v36 }
  0xa9   :  { %vm84_vm3 = vcmp.eq.s32.totalorder %v59_v38, %v62_v37 }
  0xab   :  { %v71_v39 = vpop.permute.xlu1 %70 }
  0xac   :  { %v65_v40 = vpop.permute.xlu0 %64  ;;  %vm87_vm1 = vcmp.eq.s32.totalorder %v59_v38, %v71_v39 }
  0xad   :  { %vm85_vm2 = vcmp.eq.s32.totalorder %v59_v38, %v65_v40  ;;  %vm2185_vm4 = vmpackc.low %vm87_vm1, %vm86_vm0 }
  0xae   :  { %vm1514_vm5 = vmpackc.low %vm85_vm2, %vm84_vm3 }
  0xaf   :  { %1515 = vmatmul.mubr.msk.bf16.vlgmr.msra.gmra.mrb[0].mxu0 %vm1514_vm5, %v2092_v45  ;;  %1671 = vmatprep.mubr.msk.bf16.mxu1 %vm1514_vm5, %v2092_v45  ;;  %v77_v46 = vpop.permute.xlu1 %76 }
  0xb0   :  { %v74_v47 = vpop.permute.xlu0 %73  ;;  %608 = vmatpush1.bf16.msra.mxu0 %v2183_v41  ;;  %vm89_vm6 = vcmp.eq.s32.totalorder %v59_v38, %v77_v46  ;;  %1672 = vmatmul.mubr.msk.bf16.vlgmr.msra.gmra.mrb[0].mxu1 %vm2185_vm4, %v2092_v45 }
  0xb1   :  { %vm88_vm7 = vcmp.eq.s32.totalorder %v59_v38, %v74_v47  ;;  %609 = vmatprep.subr.bf16.mxu0 %v2189_v43  ;;  %323 = vmatprep.mubr.bf16.mxu0 %v2660_v0 }
  0xb2   :  { %vm2201_vm8 = vmpackc.low %vm89_vm6, %vm88_vm7  ;;  %1680 = vmatpush3.bf16.msra.mxu1 %v2191_v44 }
  0xb3   :  { %1675 = vmatprep.mubr.msk.bf16.mxu1 %vm2201_vm8, %v2092_v45  ;;  %v83_v52 = vpop.permute.xlu1 %82  ;;  %1681 = vmatprep.subr.bf16.mxu1 %v2662_v34 }
  0xb4   :  { %v80_v53 = vpop.permute.xlu0 %79  ;;  %610 = vmatpush1.bf16.msra.mxu0 %v2199_v48  ;;  %vm91_vm9 = vcmp.eq.s32.totalorder %v59_v38, %v83_v52 }
  0xb5   :  { %vm90_vm10 = vcmp.eq.s32.totalorder %v59_v38, %v80_v53  ;;  %611 = vmatprep.subr.bf16.mxu0 %v2207_v50 }
  0xb6   :  { %vm2219_vm11 = vmpackc.low %vm91_vm9, %vm90_vm10  ;;  %1682 = vmatpush3.bf16.msra.mxu1 %v2213_v51 }
  0xb7   :  { %1517 = vmatmul.mubr.msk.bf16.gmra.mrb[4].mxu0 %vm2185_vm4, %v2092_v45  ;;  %1683 = vmatprep.subr.bf16.mxu1 %v2662_v34 }
  0xb8   :  { %612 = vmatpush1.bf16.msra.mxu0 %v2217_v54  ;;  %1676 = vmatmul.mubr.msk.bf16.gmra.mrb[4].mxu1 %vm2219_vm11, %v2092_v45 }
  0xb9   :  { %613 = vmatprep.subr.bf16.mxu0 %v2224_v56  ;;  %333 = vmatprep.mubr.bf16.mxu0 %v2660_v0 }
  0xba   :  { %1684 = vmatpush3.bf16.msra.mxu1 %v2227_v57  ;;  %1695 = vmatprep.mubr.msk.bf16.mxu1 %vm2093_vm12, %v2662_v34 }
  0xbb   :  { %1685 = vmatprep.subr.bf16.mxu1 %v2662_v34 }
  0xbc   :  { %614 = vmatpush1.bf16.msra.mxu0 %v2237_v58 }
  0xbd   :  { %615 = vmatprep.subr.bf16.mxu0 %v2241_v59 }
  0xbe   :  { %1686 = vmatpush3.bf16.msra.mxu1 %v2244_v60 }
  0xbf   :  { %1519 = vmatmul.mubr.msk.bf16.gmra.mrb[8].mxu0 %vm2201_vm8, %v2092_v45  ;;  %1687 = vmatprep.subr.bf16.mxu1 %v2662_v34 }
  0xc0   :  { %616 = vmatpush1.bf16.msra.mxu0 %v2250_v61  ;;  %343 = vmatprep.mubr.bf16.mxu0 %v2660_v0 }
  0xc1   :  { %617 = vmatprep.subr.bf16.mxu0 %v2253_v62 }
  0xc2   :  { %1688 = vmatpush3.bf16.msra.mxu1 %v2256_v63 }
  0xc3   :  { %1689 = vmatprep.subr.bf16.mxu1 %v2662_v34 }
  0xc4   :  { %618 = vmatpush1.bf16.msra.mxu0 %v2263_v1 }
  0xc5   :  { %619 = vmatprep.subr.bf16.mxu0 %v2267_v2 }
  0xc6   :  { %1690 = vmatpush3.bf16.msra.mxu1 %v2270_v3 }
  0xc7   :  { %1521 = vmatmul.mubr.msk.bf16.gmra.mrb[12].mxu0 %vm2219_vm11, %v2092_v45  ;;  %1691 = vmatprep.subr.bf16.mxu1 %v2662_v34 }
  0xc8   :  { %620 = vmatpush1.bf16.msra.mxu0 %v2274_v4  ;;  %639 = vmatprep.mubr.bf16.mxu0 %v2660_v0 }
  0xc9   :  { %621 = vmatprep.subr.bf16.mxu0 %v2277_v5 }
  0xca   :  { %1692 = vmatpush3.bf16.msra.mxu1 %v2280_v6 }
  0xcb   :  { %1693 = vmatprep.subr.bf16.mxu1 %v2662_v34 }
  0xcc   :  { %622 = vmatpush1.bf16.msra.mxu0 %v2287_v7 }
  0xcd   :  { %720 = vmatprep.subr.bf16.mxu0 %v2178_v33 }
  0xce   :  { %1694 = vmatpush3.bf16.msra.mxu1 %v2292_v8 }
  0xcf   :  { %640 = vmatmul.mubr.bf16.vlgmr.msra.gmra.mrb[16].mxu0 %v2660_v0  ;;  %1699 = vmatprep.subr.bf16.mxu1 %v2662_v34 }
  0xd0   :  { %721 = vmatpush1.bf16.msra.mxu0 %v2183_v41  ;;  %752 = vmatprep.mubr.bf16.mxu0 %v2660_v0 }
  0xd1   :  { %1696 = vmatmul.mubr.bf16.vlgmr.msra.gmra.mrb[8].mxu1 %v2660_v0  ;;  %722 = vmatprep.subr.bf16.mxu0 %v2189_v43 }
  0xd2   :  { %1700 = vmatpush3.bf16.msra.mxu1 %v2191_v44  ;;  %1715 = vmatprep.mubr.msk.bf16.mxu1 %vm2093_vm12, %v2662_v34 }
  0xd3   :  { %1701 = vmatprep.subr.bf16.mxu1 %v2662_v34 }
  0xd4   :  { %723 = vmatpush1.bf16.msra.mxu0 %v2199_v48 }
  0xd5   :  { %724 = vmatprep.subr.bf16.mxu0 %v2207_v50 }
  0xd6   :  { %1702 = vmatpush3.bf16.msra.mxu1 %v2213_v51 }
  0xd7   :  { %1703 = vmatprep.subr.bf16.mxu1 %v2662_v34 }
  0xd8   :  { %725 = vmatpush1.bf16.msra.mxu0 %v2217_v54 }
  0xd9   :  { %726 = vmatprep.subr.bf16.mxu0 %v2224_v56 }
  0xda   :  { %1704 = vmatpush3.bf16.msra.mxu1 %v2227_v57 }
  0xdb   :  { %1705 = vmatprep.subr.bf16.mxu1 %v2662_v34 }
  0xdc   :  { %727 = vmatpush1.bf16.msra.mxu0 %v2237_v58 }
  0xdd   :  { %728 = vmatprep.subr.bf16.mxu0 %v2241_v59 }
  0xde   :  { %1706 = vmatpush3.bf16.msra.mxu1 %v2244_v60 }
  0xdf   :  { %1707 = vmatprep.subr.bf16.mxu1 %v2662_v34 }
  0xe0   :  { %729 = vmatpush1.bf16.msra.mxu0 %v2250_v61 }
  0xe1   :  { %730 = vmatprep.subr.bf16.mxu0 %v2253_v62 }
  0xe2   :  { %1708 = vmatpush3.bf16.msra.mxu1 %v2256_v63 }
  0xe3   :  { %1709 = vmatprep.subr.bf16.mxu1 %v2662_v34 }
  0xe4   :  { %731 = vmatpush1.bf16.msra.mxu0 %v2263_v1 }
  0xe5   :  { %732 = vmatprep.subr.bf16.mxu0 %v2267_v2 }
  0xe6   :  { %1710 = vmatpush3.bf16.msra.mxu1 %v2270_v3 }
  0xe7   :  { %1711 = vmatprep.subr.bf16.mxu1 %v2662_v34 }
  0xe8   :  { %733 = vmatpush1.bf16.msra.mxu0 %v2274_v4 }
  0xe9   :  { %734 = vmatprep.subr.bf16.mxu0 %v2277_v5 }
  0xea   :  { %1712 = vmatpush3.bf16.msra.mxu1 %v2280_v6 }
  0xeb   :  { %1713 = vmatprep.subr.bf16.mxu1 %v2662_v34 }
  0xec   :  { %735 = vmatpush1.bf16.msra.mxu0 %v2287_v7 }
  0xed   :  { %828 = vmatprep.subr.bf16.mxu0 %v2178_v33 }
  0xee   :  { %1714 = vmatpush3.bf16.msra.mxu1 %v2292_v8 }
  0xef   :  { %1719 = vmatprep.subr.bf16.mxu1 %v2662_v34 }
 0x182   :  { %v315_v17 = vpop.f32.mrb[0].mxu0 }
 0x183   :  { %v316_v18 = vadd.f32 %v315_v17, %v141_v14  ;;  %v317_v19 = vpop.f32.mrb[1].mxu0  ;;  %v1673_v20 = vpop.f32.mrb[0].mxu1 }
 0x184   :  { %v318_v21 = vadd.f32 %v317_v19, %v145_v15  ;;  %v2340_v22 = vadd.f32 %v1673_v20, %v149_v16  ;;  %v319_v23 = vpop.f32.mrb[2].mxu0  ;;  %v388_v24 = vpop.f32.mrb[1].mxu1 }
 0x185   :  { %v2342_v25 = vadd.f32 %v319_v23, %v141_v14  ;;  %v389_v26 = vadd.f32 %v388_v24, %v149_v16  ;;  %v321_v27 = vpop.f32.mrb[3].mxu0  ;;  %v1674_v28 = vpop.f32.mrb[2].mxu1 }
 0x186   :  { %v2344_v29 = vadd.f32 %v321_v27, %v145_v15  ;;  %v2346_v30 = vadd.f32 %v1674_v28, %v149_v16  ;;  %v391_v31 = vpop.f32.mrb[3].mxu1 }
 0x187   :  { %v2348_v32 = vadd.f32 %v391_v31, %v149_v16 }
 0x18a   :  { %v325_v35 = vpop.f32.mrb[4].mxu0 }
 0x18b   :  { %v2350_v36 = vadd.f32 %v325_v35, %v141_v14  ;;  %v327_v37 = vpop.f32.mrb[5].mxu0  ;;  %v1677_v38 = vpop.f32.mrb[4].mxu1 }
 0x18c   :  { %v2352_v39 = vadd.f32 %v327_v37, %v145_v15  ;;  %v2354_v40 = vadd.f32 %v1677_v38, %v149_v16  ;;  %v329_v42 = vpop.f32.mrb[6].mxu0  ;;  %v404_v45 = vpop.f32.mrb[5].mxu1 }
 0x18d   :  { %v2356_v46 = vadd.f32 %v329_v42, %v141_v14  ;;  %v2358_v47 = vadd.f32 %v404_v45, %v149_v16  ;;  %v331_v49 = vpop.f32.mrb[7].mxu0  ;;  %v1678_v52 = vpop.f32.mrb[6].mxu1 }
 0x18e   :  { %2670 = vst [vmem:[#allocation12_spill] sm:$0xff] %v2354_v40  ;;  %v2360_v53 = vadd.f32 %v331_v49, %v145_v15  ;;  %v2362_v55 = vadd.f32 %v1678_v52, %v149_v16  ;;  %v407_v9 = vpop.f32.mrb[7].mxu1 }
 0x18f   :  { %v2364_v10 = vadd.f32 %v407_v9, %v149_v16 }
 0x190   :  { %2671 = vst [vmem:[#allocation13_spill] sm:$0xff] %v2362_v55 }
 0x192   :  { %v335_v11 = vpop.f32.mrb[8].mxu0 }
 0x193   :  { %v2366_v12 = vadd.f32 %v335_v11, %v141_v14  ;;  %v337_v13 = vpop.f32.mrb[9].mxu0 }
 0x194   :  { %v2368_v17 = vadd.f32 %v337_v13, %v145_v15  ;;  %v339_v19 = vpop.f32.mrb[10].mxu0 }
 0x195   :  { %v2370_v20 = vadd.f32 %v339_v19, %v141_v14  ;;  %v341_v23 = vpop.f32.mrb[11].mxu0 }
 0x196   :  { %v2372_v24 = vadd.f32 %v341_v23, %v145_v15 }
 0x19a   :  { %v345_v27 = vpop.f32.mrb[12].mxu0 }
 0x19b   :  { %v2374_v28 = vadd.f32 %v345_v27, %v141_v14  ;;  %v347_v31 = vpop.f32.mrb[13].mxu0 }
 0x19c   :  { %v2376_v35 = vadd.f32 %v347_v31, %v145_v15  ;;  %v349_v16 = vpop.f32.mrb[14].mxu0 }
 0x19d   :  { %v2378_v37 = vadd.f32 %v349_v16, %v141_v14  ;;  %v351_v38 = vpop.f32.mrb[15].mxu0  ;;  %v2385_v14 = vld [vmem:[%s2658_s4] ss:$0 sm:$0xff]  ;;  %s2094_s4 = smov [#allocation8]  }
 0x19e   :  { %v2380_v42 = vadd.f32 %v351_v38, %v145_v15  ;;  %s1477_s10 = sshll.u32 %s2094_s4, 4  ;;  %s1478_s10 = int_to_ptr.vmem [resolvable:$true] %s1477_s10 }
 0x19f   :  { %s2058_s11 = scalar_lea.vmem %s1478_s10, 1024  ;;  %p2063_p3 = scmp.lt.s32.totalorder %s1478_s10, %s1478_s10 }
 0x1a0   :  { %p2059_p2 = scmp.ne.s32.totalorder %s1478_s10, %s2058_s11  ;;  %p2064_p4 = scmp.lt.s32.totalorder %s2058_s11, %s2058_s11 }
 0x1a2   :  { %v641_v45 = vpop.f32.mrb[16].mxu0  ;;  %p2065_p5 = por %p2064_p4, %p2063_p3 }
 0x1a3   :  { %v688_v49 = vadd.f32 %v641_v45, %v316_v18  ;;  %v643_v52 = vpop.f32.mrb[17].mxu0 }
 0x1a4   :  { %v695_v9 = vadd.f32 %v643_v52, %v318_v21  ;;  %v645_v11 = vpop.f32.mrb[18].mxu0  ;;  %v682_v13 = vpop.f32.mrb[8].mxu1  ;;  %p2066_p6 = pnand %p2065_p5, %p2059_p2 }
 0x1a5   :  { %v1554_v19 = vmul.f32 -1.442695, %v688_v49  ;;  %v646_v23 = vpop.f32.mrb[19].mxu0  ;;  %v1697_v0 = vpop.f32.mrb[9].mxu1  ;;  %v708_v15 = vadd.f32 %v2385_v14, %v682_v13 }
 0x1a6   :  { %v685_v27 = vpop.f32.mrb[10].mxu1  ;;  %v1555_v31 = vmul.f32 -1.442695, %v695_v9  ;;  %v2673_v9 = vmov 0  }
 0x1a7   :  { %1916 = vpow2.f32 %v1554_v19  ;;  %v1698_v34 = vpop.f32.mrb[11].mxu1 }
 0x1a8   :  { %1918 = vpow2.f32 %v1555_v31 }
 0x1b1   :  { %v1917_v55 = vpop.eup %1916 }
 0x1b2   :  { %v692_v40 = vadd.f32 1.0, %v1917_v55  ;;  %v1919_v18 = vpop.eup %1918 }
 0x1b3   :  { %v699_v38 = vadd.f32 1.0, %v1919_v18 }
 0x1b4   :  { %1920 = vrcp.f32 %v692_v40 }
 0x1be   :  { %v1921_v21 = vpop.eup %1920 }
 0x1bf   :  { %v709_v16 = vmul.f32 %v1921_v21, %v708_v15 }
 0x1c1   :  { %v710_v0 = vadd.f32 %v709_v16, %v389_v26  ;;  %v2672_v26 = vmov 0.0  }
 0x1c3   :  { %1922 = vtanh.f32 %v710_v0 }
 0x1c4   :  { %1924 = vrcp.f32 %v699_v38 }
 0x1cd   :  { %v1923_v34 = vpop.eup %1922 }
 0x1ce   :  { %v712_v45 = vsub.f32 0.0, %v1923_v34  ;;  %v1925_v49 = vpop.eup %1924 }
 0x1d0   :  { %v713_v55 = vmul.f32 %v1925_v49, %v712_v45 }
 0x1d2   :  { %v2388_v52 = vadd.f32 %v1923_v34, %v713_v55 }
 0x1d4   :  { %v715_v40 = vpack.c.bf16 %v2388_v52, %v2388_v52  ;;  %716 = vst [vmem:[#allocation8] sm:$0xff] %v2388_v52 }
 0x1d6   :  { %753 = vmatmul.mubr.bf16.vlgmr.msra.gmra.mrb[20].mxu0 %v715_v40  ;;  %1716 = vmatmul.mubr.bf16.vlgmr.msra.gmra.mrb[12].mxu1 %v715_v40 }
 0x1d7   :  { %829 = vmatpush1.bf16.msra.mxu0 %v2183_v41  ;;  %1720 = vmatpush3.bf16.msra.mxu1 %v2191_v44 }
 0x1d8   :  { %830 = vmatprep.subr.bf16.mxu0 %v2189_v43  ;;  %1721 = vmatprep.subr.bf16.mxu1 %v2672_v26 }
 0x1d9   :  { %860 = vmatprep.mubr.bf16.mxu0 %v2673_v9  ;;  %1735 = vmatprep.mubr.msk.bf16.mxu1 %vm2093_vm12, %v2672_v26 }
 0x1db   :  { %831 = vmatpush1.bf16.msra.mxu0 %v2199_v48  ;;  %1722 = vmatpush3.bf16.msra.mxu1 %v2213_v51 }
 0x1dc   :  { %832 = vmatprep.subr.bf16.mxu0 %v2207_v50  ;;  %1723 = vmatprep.subr.bf16.mxu1 %v2672_v26 }
 0x1df   :  { %833 = vmatpush1.bf16.msra.mxu0 %v2217_v54  ;;  %1724 = vmatpush3.bf16.msra.mxu1 %v2227_v57 }
 0x1e0   :  { %834 = vmatprep.subr.bf16.mxu0 %v2224_v56  ;;  %1725 = vmatprep.subr.bf16.mxu1 %v2672_v26 }
 0x1e3   :  { %835 = vmatpush1.bf16.msra.mxu0 %v2237_v58  ;;  %1726 = vmatpush3.bf16.msra.mxu1 %v2244_v60 }
 0x1e4   :  { %836 = vmatprep.subr.bf16.mxu0 %v2241_v59  ;;  %1727 = vmatprep.subr.bf16.mxu1 %v2672_v26 }
 0x1e7   :  { %837 = vmatpush1.bf16.msra.mxu0 %v2250_v61  ;;  %1728 = vmatpush3.bf16.msra.mxu1 %v2256_v63 }
 0x1e8   :  { %838 = vmatprep.subr.bf16.mxu0 %v2253_v62  ;;  %1729 = vmatprep.subr.bf16.mxu1 %v2672_v26 }
 0x1eb   :  { %839 = vmatpush1.bf16.msra.mxu0 %v2263_v1  ;;  %1730 = vmatpush3.bf16.msra.mxu1 %v2270_v3 }
 0x1ec   :  { %840 = vmatprep.subr.bf16.mxu0 %v2267_v2  ;;  %1731 = vmatprep.subr.bf16.mxu1 %v2672_v26 }
 0x1ef   :  { %841 = vmatpush1.bf16.msra.mxu0 %v2274_v4  ;;  %1732 = vmatpush3.bf16.msra.mxu1 %v2280_v6 }
 0x1f0   :  { %842 = vmatprep.subr.bf16.mxu0 %v2277_v5  ;;  %1733 = vmatprep.subr.bf16.mxu1 %v2672_v26 }
 0x1f3   :  { %843 = vmatpush1.bf16.msra.mxu0 %v2287_v7  ;;  %1734 = vmatpush3.bf16.msra.mxu1 %v2292_v8 }
 0x1f4   :  { %936 = vmatprep.subr.bf16.mxu0 %v2178_v33  ;;  %1739 = vmatprep.subr.bf16.mxu1 %v2672_v26 }
 0x2a9   :  { %v754_v11 = vpop.f32.mrb[20].mxu0  ;;  %v795_v13 = vpop.f32.mrb[12].mxu1 }
 0x2aa   :  { %v801_v19 = vadd.f32 %v754_v11, %v2342_v25  ;;  %v756_v23 = vpop.f32.mrb[21].mxu0  ;;  %v1717_v27 = vpop.f32.mrb[13].mxu1  ;;  %v815_v55 = vadd.f32 %v2385_v14, %v795_v13 }
 0x2ab   :  { %v808_v31 = vadd.f32 %v756_v23, %v2344_v29  ;;  %v758_v15 = vpop.f32.mrb[22].mxu0  ;;  %v798_v18 = vpop.f32.mrb[14].mxu1 }
 0x2ac   :  { %v1557_v21 = vmul.f32 -1.442695, %v801_v19  ;;  %v759_v16 = vpop.f32.mrb[23].mxu0  ;;  %v1718_v38 = vpop.f32.mrb[15].mxu1 }
 0x2ad   :  { %v1558_v0 = vmul.f32 -1.442695, %v808_v31 }
 0x2ae   :  { %1926 = vpow2.f32 %v1557_v21 }
 0x2af   :  { %1928 = vpow2.f32 %v1558_v0 }
 0x2b8   :  { %v1927_v34 = vpop.eup %1926 }
 0x2b9   :  { %v805_v45 = vadd.f32 1.0, %v1927_v34  ;;  %v1929_v49 = vpop.eup %1928 }
 0x2ba   :  { %v812_v27 = vadd.f32 1.0, %v1929_v49 }
 0x2bb   :  { %1930 = vrcp.f32 %v805_v45 }
 0x2c5   :  { %v1931_v40 = vpop.eup %1930 }
 0x2c6   :  { %v816_v25 = vmul.f32 %v1931_v40, %v815_v55 }
 0x2c8   :  { %v817_v11 = vadd.f32 %v816_v25, %v2348_v32 }
 0x2ca   :  { %1932 = vtanh.f32 %v817_v11 }
 0x2cb   :  { %1934 = vrcp.f32 %v812_v27 }
 0x2d4   :  { %v1933_v29 = vpop.eup %1932 }
 0x2d5   :  { %v819_v19 = vsub.f32 %v2388_v52, %v1933_v29  ;;  %v1935_v23 = vpop.eup %1934 }
 0x2d7   :  { %v820_v15 = vmul.f32 %v1935_v23, %v819_v19 }
 0x2d9   :  { %v2433_v31 = vadd.f32 %v1933_v29, %v820_v15 }
 0x2db   :  { %v822_v18 = vpack.c.bf16 %v2433_v31, %v2433_v31  ;;  %824 = vst [vmem:[#allocation8 + $0x8] sm:$0xff] %v2433_v31 }
 0x2dd   :  { %861 = vmatmul.mubr.bf16.vlgmr.msra.gmra.mrb[24].mxu0 %v822_v18  ;;  %1736 = vmatmul.mubr.bf16.vlgmr.msra.gmra.mrb[16].mxu1 %v822_v18 }
 0x2de   :  { %937 = vmatpush1.bf16.msra.mxu0 %v2183_v41  ;;  %1740 = vmatpush3.bf16.msra.mxu1 %v2191_v44 }
 0x2df   :  { %938 = vmatprep.subr.bf16.mxu0 %v2189_v43  ;;  %1741 = vmatprep.subr.bf16.mxu1 %v2672_v26 }
 0x2e0   :  { %968 = vmatprep.mubr.bf16.mxu0 %v2673_v9  ;;  %1755 = vmatprep.mubr.msk.bf16.mxu1 %vm2093_vm12, %v2672_v26 }
 0x2e2   :  { %939 = vmatpush1.bf16.msra.mxu0 %v2199_v48  ;;  %1742 = vmatpush3.bf16.msra.mxu1 %v2213_v51 }
 0x2e3   :  { %940 = vmatprep.subr.bf16.mxu0 %v2207_v50  ;;  %1743 = vmatprep.subr.bf16.mxu1 %v2672_v26 }
 0x2e6   :  { %941 = vmatpush1.bf16.msra.mxu0 %v2217_v54  ;;  %1744 = vmatpush3.bf16.msra.mxu1 %v2227_v57 }
 0x2e7   :  { %942 = vmatprep.subr.bf16.mxu0 %v2224_v56  ;;  %1745 = vmatprep.subr.bf16.mxu1 %v2672_v26 }
 0x2ea   :  { %943 = vmatpush1.bf16.msra.mxu0 %v2237_v58  ;;  %1746 = vmatpush3.bf16.msra.mxu1 %v2244_v60 }
 0x2eb   :  { %944 = vmatprep.subr.bf16.mxu0 %v2241_v59  ;;  %1747 = vmatprep.subr.bf16.mxu1 %v2672_v26 }
 0x2ee   :  { %945 = vmatpush1.bf16.msra.mxu0 %v2250_v61  ;;  %1748 = vmatpush3.bf16.msra.mxu1 %v2256_v63 }
 0x2ef   :  { %946 = vmatprep.subr.bf16.mxu0 %v2253_v62  ;;  %1749 = vmatprep.subr.bf16.mxu1 %v2672_v26 }
 0x2f2   :  { %947 = vmatpush1.bf16.msra.mxu0 %v2263_v1  ;;  %1750 = vmatpush3.bf16.msra.mxu1 %v2270_v3 }
 0x2f3   :  { %948 = vmatprep.subr.bf16.mxu0 %v2267_v2  ;;  %1751 = vmatprep.subr.bf16.mxu1 %v2672_v26 }
 0x2f6   :  { %949 = vmatpush1.bf16.msra.mxu0 %v2274_v4  ;;  %1752 = vmatpush3.bf16.msra.mxu1 %v2280_v6 }
 0x2f7   :  { %950 = vmatprep.subr.bf16.mxu0 %v2277_v5  ;;  %1753 = vmatprep.subr.bf16.mxu1 %v2672_v26 }
 0x2fa   :  { %951 = vmatpush1.bf16.msra.mxu0 %v2287_v7  ;;  %1754 = vmatpush3.bf16.msra.mxu1 %v2292_v8 }
 0x2fb   :  { %1044 = vmatprep.subr.bf16.mxu0 %v2178_v33  ;;  %1759 = vmatprep.subr.bf16.mxu1 %v2672_v26 }
 0x3b0   :  { %v862_v32 = vpop.f32.mrb[24].mxu0  ;;  %v903_v52 = vpop.f32.mrb[16].mxu1 }
 0x3b1   :  { %v909_v13 = vadd.f32 %v862_v32, %v2350_v36  ;;  %v864_v21 = vpop.f32.mrb[25].mxu0  ;;  %v1737_v16 = vpop.f32.mrb[17].mxu1  ;;  %v923_v29 = vadd.f32 %v2385_v14, %v903_v52 }
 0x3b2   :  { %v916_v38 = vadd.f32 %v864_v21, %v2352_v39  ;;  %v866_v0 = vpop.f32.mrb[26].mxu0  ;;  %v906_v34 = vpop.f32.mrb[18].mxu1 }
 0x3b3   :  { %v1559_v45 = vmul.f32 -1.442695, %v909_v13  ;;  %v867_v49 = vpop.f32.mrb[27].mxu0  ;;  %v1738_v55 = vpop.f32.mrb[19].mxu1 }
 0x3b4   :  { %v1560_v40 = vmul.f32 -1.442695, %v916_v38 }
 0x3b5   :  { %1936 = vpow2.f32 %v1559_v45 }
 0x3b6   :  { %1938 = vpow2.f32 %v1560_v40 }
 0x3bf   :  { %v1937_v25 = vpop.eup %1936 }
 0x3c0   :  { %v913_v11 = vadd.f32 1.0, %v1937_v25  ;;  %v1939_v27 = vpop.eup %1938 }
 0x3c1   :  { %v920_v15 = vadd.f32 1.0, %v1939_v27 }
 0x3c2   :  { %1940 = vrcp.f32 %v913_v11 }
 0x3cc   :  { %v1941_v19 = vpop.eup %1940 }
 0x3cd   :  { %v924_v36 = vmul.f32 %v1941_v19, %v923_v29 }
 0x3cf   :  { %v925_v23 = vadd.f32 %v924_v36, %v2340_v22 }
 0x3d1   :  { %1942 = vtanh.f32 %v925_v23 }
 0x3d2   :  { %1944 = vrcp.f32 %v920_v15 }
 0x3db   :  { %v1943_v39 = vpop.eup %1942 }
 0x3dc   :  { %v927_v18 = vsub.f32 %v2433_v31, %v1943_v39  ;;  %v1945_v32 = vpop.eup %1944 }
 0x3de   :  { %v928_v13 = vmul.f32 %v1945_v32, %v927_v18 }
 0x3e0   :  { %v2478_v21 = vadd.f32 %v1943_v39, %v928_v13 }
 0x3e2   :  { %v930_v16 = vpack.c.bf16 %v2478_v21, %v2478_v21  ;;  %932 = vst [vmem:[#allocation8 + $0x10] sm:$0xff] %v2478_v21 }
 0x3e4   :  { %969 = vmatmul.mubr.bf16.vlgmr.msra.gmra.mrb[28].mxu0 %v930_v16  ;;  %1756 = vmatmul.mubr.bf16.vlgmr.msra.gmra.mrb[20].mxu1 %v930_v16 }
 0x3e5   :  { %1045 = vmatpush1.bf16.msra.mxu0 %v2183_v41  ;;  %1760 = vmatpush3.bf16.msra.mxu1 %v2191_v44 }
 0x3e6   :  { %1046 = vmatprep.subr.bf16.mxu0 %v2189_v43  ;;  %1761 = vmatprep.subr.bf16.mxu1 %v2672_v26 }
 0x3e7   :  { %1076 = vmatprep.mubr.bf16.mxu0 %v2673_v9  ;;  %1775 = vmatprep.mubr.msk.bf16.mxu1 %vm2093_vm12, %v2672_v26 }
 0x3e9   :  { %1047 = vmatpush1.bf16.msra.mxu0 %v2199_v48  ;;  %1762 = vmatpush3.bf16.msra.mxu1 %v2213_v51 }
 0x3ea   :  { %1048 = vmatprep.subr.bf16.mxu0 %v2207_v50  ;;  %1763 = vmatprep.subr.bf16.mxu1 %v2672_v26 }
 0x3ed   :  { %1049 = vmatpush1.bf16.msra.mxu0 %v2217_v54  ;;  %1764 = vmatpush3.bf16.msra.mxu1 %v2227_v57 }
 0x3ee   :  { %1050 = vmatprep.subr.bf16.mxu0 %v2224_v56  ;;  %1765 = vmatprep.subr.bf16.mxu1 %v2672_v26 }
 0x3f1   :  { %1051 = vmatpush1.bf16.msra.mxu0 %v2237_v58  ;;  %1766 = vmatpush3.bf16.msra.mxu1 %v2244_v60 }
 0x3f2   :  { %1052 = vmatprep.subr.bf16.mxu0 %v2241_v59  ;;  %1767 = vmatprep.subr.bf16.mxu1 %v2672_v26 }
 0x3f5   :  { %1053 = vmatpush1.bf16.msra.mxu0 %v2250_v61  ;;  %1768 = vmatpush3.bf16.msra.mxu1 %v2256_v63 }
 0x3f6   :  { %1054 = vmatprep.subr.bf16.mxu0 %v2253_v62  ;;  %1769 = vmatprep.subr.bf16.mxu1 %v2672_v26 }
 0x3f9   :  { %1055 = vmatpush1.bf16.msra.mxu0 %v2263_v1  ;;  %1770 = vmatpush3.bf16.msra.mxu1 %v2270_v3 }
 0x3fa   :  { %1056 = vmatprep.subr.bf16.mxu0 %v2267_v2  ;;  %1771 = vmatprep.subr.bf16.mxu1 %v2672_v26 }
 0x3fd   :  { %1057 = vmatpush1.bf16.msra.mxu0 %v2274_v4  ;;  %1772 = vmatpush3.bf16.msra.mxu1 %v2280_v6 }
 0x3fe   :  { %1058 = vmatprep.subr.bf16.mxu0 %v2277_v5  ;;  %1773 = vmatprep.subr.bf16.mxu1 %v2672_v26 }
 0x401   :  { %1059 = vmatpush1.bf16.msra.mxu0 %v2287_v7  ;;  %1774 = vmatpush3.bf16.msra.mxu1 %v2292_v8 }
 0x402   :  { %1152 = vmatprep.subr.bf16.mxu0 %v2178_v33  ;;  %1779 = vmatprep.subr.bf16.mxu1 %v2672_v26 }
 0x4b7   :  { %v970_v22 = vpop.f32.mrb[28].mxu0  ;;  %v1011_v31 = vpop.f32.mrb[20].mxu1 }
 0x4b8   :  { %v1017_v52 = vadd.f32 %v970_v22, %v2356_v46  ;;  %v972_v38 = vpop.f32.mrb[29].mxu0  ;;  %v1757_v0 = vpop.f32.mrb[21].mxu1  ;;  %v1031_v36 = vadd.f32 %v2385_v14, %v1011_v31 }
 0x4b9   :  { %v1024_v34 = vadd.f32 %v972_v38, %v2360_v53  ;;  %v974_v45 = vpop.f32.mrb[30].mxu0  ;;  %v1014_v49 = vpop.f32.mrb[22].mxu1 }
 0x4ba   :  { %v1561_v55 = vmul.f32 -1.442695, %v1017_v52  ;;  %v975_v40 = vpop.f32.mrb[31].mxu0  ;;  %v1758_v25 = vpop.f32.mrb[23].mxu1 }
 0x4bb   :  { %v1562_v11 = vmul.f32 -1.442695, %v1024_v34 }
 0x4bc   :  { %1946 = vpow2.f32 %v1561_v55 }
 0x4bd   :  { %1948 = vpow2.f32 %v1562_v11 }
 0x4c6   :  { %v1947_v27 = vpop.eup %1946 }
 0x4c7   :  { %v1021_v29 = vadd.f32 1.0, %v1947_v27  ;;  %v1949_v19 = vpop.eup %1948 }
 0x4c8   :  { %v1028_v39 = vadd.f32 1.0, %v1949_v19 }
 0x4c9   :  { %1950 = vrcp.f32 %v1021_v29 }
 0x4d3   :  { %v1951_v23 = vpop.eup %1950 }
 0x4d4   :  { %v1032_v46 = vmul.f32 %v1951_v23, %v1031_v36 }
 0x4d6   :  { %v1033_v15 = vadd.f32 %v1032_v46, %v2346_v30 }
 0x4d8   :  { %1952 = vtanh.f32 %v1033_v15 }
 0x4d9   :  { %1954 = vrcp.f32 %v1028_v39 }
 0x4e2   :  { %v1953_v53 = vpop.eup %1952 }
 0x4e3   :  { %v1035_v18 = vsub.f32 %v2478_v21, %v1953_v53  ;;  %v1955_v32 = vpop.eup %1954 }
 0x4e5   :  { %v1036_v13 = vmul.f32 %v1955_v32, %v1035_v18 }
 0x4e7   :  { %v2523_v16 = vadd.f32 %v1953_v53, %v1036_v13 }
 0x4e9   :  { %v1038_v22 = vpack.c.bf16 %v2523_v16, %v2523_v16  ;;  %1040 = vst [vmem:[#allocation8 + $0x18] sm:$0xff] %v2523_v16 }
 0x4eb   :  { %1077 = vmatmul.mubr.bf16.vlgmr.msra.gmra.mrb[32].mxu0 %v1038_v22  ;;  %1776 = vmatmul.mubr.bf16.vlgmr.msra.gmra.mrb[24].mxu1 %v1038_v22 }
 0x4ec   :  { %1153 = vmatpush1.bf16.msra.mxu0 %v2183_v41  ;;  %1780 = vmatpush3.bf16.msra.mxu1 %v2191_v44 }
 0x4ed   :  { %1154 = vmatprep.subr.bf16.mxu0 %v2189_v43  ;;  %1781 = vmatprep.subr.bf16.mxu1 %v2672_v26 }
 0x4ee   :  { %1184 = vmatprep.mubr.bf16.mxu0 %v2673_v9  ;;  %1795 = vmatprep.mubr.msk.bf16.mxu1 %vm2093_vm12, %v2672_v26 }
 0x4f0   :  { %1155 = vmatpush1.bf16.msra.mxu0 %v2199_v48  ;;  %1782 = vmatpush3.bf16.msra.mxu1 %v2213_v51 }
 0x4f1   :  { %1156 = vmatprep.subr.bf16.mxu0 %v2207_v50  ;;  %1783 = vmatprep.subr.bf16.mxu1 %v2672_v26 }
 0x4f4   :  { %1157 = vmatpush1.bf16.msra.mxu0 %v2217_v54  ;;  %1784 = vmatpush3.bf16.msra.mxu1 %v2227_v57 }
 0x4f5   :  { %1158 = vmatprep.subr.bf16.mxu0 %v2224_v56  ;;  %1785 = vmatprep.subr.bf16.mxu1 %v2672_v26 }
 0x4f8   :  { %1159 = vmatpush1.bf16.msra.mxu0 %v2237_v58  ;;  %1786 = vmatpush3.bf16.msra.mxu1 %v2244_v60 }
 0x4f9   :  { %1160 = vmatprep.subr.bf16.mxu0 %v2241_v59  ;;  %1787 = vmatprep.subr.bf16.mxu1 %v2672_v26 }
 0x4fc   :  { %1161 = vmatpush1.bf16.msra.mxu0 %v2250_v61  ;;  %1788 = vmatpush3.bf16.msra.mxu1 %v2256_v63 }
 0x4fd   :  { %1162 = vmatprep.subr.bf16.mxu0 %v2253_v62  ;;  %1789 = vmatprep.subr.bf16.mxu1 %v2672_v26 }
 0x500   :  { %1163 = vmatpush1.bf16.msra.mxu0 %v2263_v1  ;;  %1790 = vmatpush3.bf16.msra.mxu1 %v2270_v3 }
 0x501   :  { %1164 = vmatprep.subr.bf16.mxu0 %v2267_v2  ;;  %1791 = vmatprep.subr.bf16.mxu1 %v2672_v26 }
 0x504   :  { %1165 = vmatpush1.bf16.msra.mxu0 %v2274_v4  ;;  %1792 = vmatpush3.bf16.msra.mxu1 %v2280_v6 }
 0x505   :  { %1166 = vmatprep.subr.bf16.mxu0 %v2277_v5  ;;  %1793 = vmatprep.subr.bf16.mxu1 %v2672_v26 }
 0x508   :  { %1167 = vmatpush1.bf16.msra.mxu0 %v2287_v7  ;;  %1794 = vmatpush3.bf16.msra.mxu1 %v2292_v8 }
 0x509   :  { %1260 = vmatprep.subr.bf16.mxu0 %v2178_v33  ;;  %1799 = vmatprep.subr.bf16.mxu1 %v2672_v26 }
 0x5be   :  { %v1078_v30 = vpop.f32.mrb[32].mxu0  ;;  %v1119_v21 = vpop.f32.mrb[24].mxu1 }
 0x5bf   :  { %v1125_v31 = vadd.f32 %v1078_v30, %v2366_v12  ;;  %v1080_v52 = vpop.f32.mrb[33].mxu0  ;;  %v1777_v38 = vpop.f32.mrb[25].mxu1  ;;  %v1139_v29 = vadd.f32 %v2385_v14, %v1119_v21 }
 0x5c0   :  { %v1132_v0 = vadd.f32 %v1080_v52, %v2368_v17  ;;  %v1082_v34 = vpop.f32.mrb[34].mxu0  ;;  %v1122_v45 = vpop.f32.mrb[26].mxu1  ;;  %v1997_v52 = vld [vmem:[#allocation6] ss:$12 sps:$4 sm:$0xff]   ;;  %v1999_v38 = vld [vmem:[#allocation6 + $0x1c] ss:$12 sps:$4 sm:$0xff]  }
 0x5c1   :  { %v1563_v49 = vmul.f32 -1.442695, %v1125_v31  ;;  %v1083_v55 = vpop.f32.mrb[35].mxu0  ;;  %v1778_v40 = vpop.f32.mrb[27].mxu1  ;;  %v2001_v34 = vld [vmem:[#allocation6 + $0x20] ss:$12 sps:$4 sm:$0xff]  }
 0x5c2   :  { %v1564_v25 = vmul.f32 -1.442695, %v1132_v0  ;;  %v2000_v0 = vld [vmem:[#allocation6 + $0x18] ss:$12 sps:$4 sm:$0xff]   ;;  %v2002_v45 = vld [vmem:[#allocation6 + $0x34] ss:$12 sps:$4 sm:$0xff]  }
 0x5c3   :  { %1956 = vpow2.f32 %v1563_v49  ;;  %v2003_v49 = vld [vmem:[#allocation6 + $0x30] ss:$12 sps:$4 sm:$0xff]   ;;  %v2004_v55 = vld [vmem:[#allocation6 + $0x38] ss:$12 sps:$4 sm:$0xff]  }
 0x5c4   :  { %1958 = vpow2.f32 %v1564_v25  ;;  %v2005_v40 = vld [vmem:[#allocation6 + $0x4c] ss:$12 sps:$4 sm:$0xff]   ;;  %v2007_v25 = vld [vmem:[#allocation6 + $0x50] ss:$12 sps:$4 sm:$0xff]  }
 0x5cd   :  { %v1957_v11 = vpop.eup %1956 }
 0x5ce   :  { %v1129_v27 = vadd.f32 1.0, %v1957_v11  ;;  %v1959_v33 = vpop.eup %1958  ;;  %v2008_v11 = vld [vmem:[#allocation6 + $0x64] ss:$12 sps:$4 sm:$0xff]  }
 0x5cf   :  { %v1136_v23 = vadd.f32 1.0, %v1959_v33  ;;  %v2010_v33 = vld [vmem:[#allocation6 + $0x68] ss:$12 sps:$4 sm:$0xff]  }
 0x5d0   :  { %1960 = vrcp.f32 %v1129_v27  ;;  %v2009_v27 = vld [vmem:[#allocation6 + $0x60] ss:$12 sps:$4 sm:$0xff]  }
 0x5da   :  { %v1961_v19 = vpop.eup %1960 }
 0x5db   :  { %v1140_v12 = vmul.f32 %v1961_v19, %v1139_v29  ;;  %v2011_v29 = vld [vmem:[#allocation6 + $0x7c] ss:$12 sps:$4 sm:$0xff]   ;;  %v2012_v19 = vld [vmem:[#allocation6 + $0x78] ss:$12 sps:$4 sm:$0xff]  }
 0x5dd   :  { %v1141_v36 = vadd.f32 %v1140_v12, %v2358_v47  ;;  %v2013_v12 = vld [vmem:[#allocation6 + $0x94] ss:$12 sps:$4 sm:$0xff]  }
 0x5df   :  { %1962 = vtanh.f32 %v1141_v36 }
 0x5e0   :  { %1964 = vrcp.f32 %v1136_v23 }
 0x5e9   :  { %v1963_v17 = vpop.eup %1962 }
 0x5ea   :  { %v1143_v46 = vsub.f32 %v2523_v16, %v1963_v17  ;;  %v1965_v15 = vpop.eup %1964 }
 0x5ec   :  { %v1144_v39 = vmul.f32 %v1965_v15, %v1143_v46 }
 0x5ee   :  { %v2568_v53 = vadd.f32 %v1963_v17, %v1144_v39 }
 0x5f0   :  { %v1146_v18 = vpack.c.bf16 %v2568_v53, %v2568_v53  ;;  %1148 = vst [vmem:[#allocation8 + $0x20] sm:$0xff] %v2568_v53 }
 0x5f2   :  { %1185 = vmatmul.mubr.bf16.vlgmr.msra.gmra.mrb[36].mxu0 %v1146_v18  ;;  %1796 = vmatmul.mubr.bf16.vlgmr.msra.gmra.mrb[28].mxu1 %v1146_v18 }
 0x5f3   :  { %1261 = vmatpush1.bf16.msra.mxu0 %v2183_v41  ;;  %1800 = vmatpush3.bf16.msra.mxu1 %v2191_v44  ;;  %v1996_v41 = vld [vmem:[#allocation6 + $0x4] ss:$12 sps:$4 sm:$0xff]  }
 0x5f4   :  { %1262 = vmatprep.subr.bf16.mxu0 %v2189_v43  ;;  %1801 = vmatprep.subr.bf16.mxu1 %v2672_v26 }
 0x5f5   :  { %1292 = vmatprep.mubr.bf16.mxu0 %v2673_v9  ;;  %1815 = vmatprep.mubr.msk.bf16.mxu1 %vm2093_vm12, %v2672_v26 }
 0x5f7   :  { %1263 = vmatpush1.bf16.msra.mxu0 %v2199_v48  ;;  %1802 = vmatpush3.bf16.msra.mxu1 %v2213_v51 }
 0x5f8   :  { %1264 = vmatprep.subr.bf16.mxu0 %v2207_v50  ;;  %1803 = vmatprep.subr.bf16.mxu1 %v2672_v26 }
 0x5fb   :  { %1265 = vmatpush1.bf16.msra.mxu0 %v2217_v54  ;;  %1804 = vmatpush3.bf16.msra.mxu1 %v2227_v57 }
 0x5fc   :  { %1266 = vmatprep.subr.bf16.mxu0 %v2224_v56  ;;  %1805 = vmatprep.subr.bf16.mxu1 %v2672_v26 }
 0x5ff   :  { %1267 = vmatpush1.bf16.msra.mxu0 %v2237_v58  ;;  %1806 = vmatpush3.bf16.msra.mxu1 %v2244_v60 }
 0x600   :  { %1268 = vmatprep.subr.bf16.mxu0 %v2241_v59  ;;  %1807 = vmatprep.subr.bf16.mxu1 %v2672_v26 }
 0x603   :  { %1269 = vmatpush1.bf16.msra.mxu0 %v2250_v61  ;;  %1808 = vmatpush3.bf16.msra.mxu1 %v2256_v63 }
 0x604   :  { %1270 = vmatprep.subr.bf16.mxu0 %v2253_v62  ;;  %1809 = vmatprep.subr.bf16.mxu1 %v2672_v26 }
 0x607   :  { %1271 = vmatpush1.bf16.msra.mxu0 %v2263_v1  ;;  %1810 = vmatpush3.bf16.msra.mxu1 %v2270_v3 }
 0x608   :  { %1272 = vmatprep.subr.bf16.mxu0 %v2267_v2  ;;  %1811 = vmatprep.subr.bf16.mxu1 %v2672_v26 }
 0x60b   :  { %1273 = vmatpush1.bf16.msra.mxu0 %v2274_v4  ;;  %1812 = vmatpush3.bf16.msra.mxu1 %v2280_v6 }
 0x60c   :  { %1274 = vmatprep.subr.bf16.mxu0 %v2277_v5  ;;  %1813 = vmatprep.subr.bf16.mxu1 %v2672_v26 }
 0x60f   :  { %1275 = vmatpush1.bf16.msra.mxu0 %v2287_v7  ;;  %1814 = vmatpush3.bf16.msra.mxu1 %v2292_v8 }
 0x610   :  { %1368 = vmatprep.subr.bf16.mxu0 %v1996_v41  ;;  %1819 = vmatprep.subr.bf16.mxu1 %v2672_v26 }
 0x6c5   :  { %v1186_v43 = vpop.f32.mrb[36].mxu0  ;;  %v1227_v44 = vpop.f32.mrb[28].mxu1 }
 0x6c6   :  { %v1233_v48 = vadd.f32 %v1186_v43, %v2370_v20  ;;  %v1188_v50 = vpop.f32.mrb[37].mxu0  ;;  %v1797_v51 = vpop.f32.mrb[29].mxu1  ;;  %v1247_v2 = vadd.f32 %v2385_v14, %v1227_v44  ;;  %v2674_v44 = vld [vmem:[#allocation12_spill] sm:$0xff] }
 0x6c7   :  { %v1240_v54 = vadd.f32 %v1188_v50, %v2372_v24  ;;  %v1190_v56 = vpop.f32.mrb[38].mxu0  ;;  %v1230_v57 = vpop.f32.mrb[30].mxu1 }
 0x6c8   :  { %v1565_v58 = vmul.f32 -1.442695, %v1233_v48  ;;  %v1191_v59 = vpop.f32.mrb[39].mxu0  ;;  %v1798_v60 = vpop.f32.mrb[31].mxu1 }
 0x6c9   :  { %v1566_v61 = vmul.f32 -1.442695, %v1240_v54 }
 0x6ca   :  { %1966 = vpow2.f32 %v1565_v58 }
 0x6cb   :  { %1968 = vpow2.f32 %v1566_v61 }
 0x6d4   :  { %v1967_v62 = vpop.eup %1966 }
 0x6d5   :  { %v1237_v63 = vadd.f32 1.0, %v1967_v62  ;;  %v1969_v1 = vpop.eup %1968 }
 0x6d6   :  { %v1244_v13 = vadd.f32 1.0, %v1969_v1 }
 0x6d7   :  { %1970 = vrcp.f32 %v1237_v63 }
 0x6e1   :  { %v1971_v47 = vpop.eup %1970 }
 0x6e2   :  { %v1248_v20 = vmul.f32 %v1971_v47, %v1247_v2 }
 0x6e4   :  { %v1249_v32 = vadd.f32 %v1248_v20, %v2364_v10  ;;  %v1998_v10 = vld [vmem:[#allocation6 + $0x8] ss:$12 sps:$4 sm:$0xff]  }
 0x6e6   :  { %1972 = vtanh.f32 %v1249_v32 }
 0x6e7   :  { %1974 = vrcp.f32 %v1244_v13 }
 0x6f0   :  { %v1973_v24 = vpop.eup %1972 }
 0x6f1   :  { %v1251_v16 = vsub.f32 %v2568_v53, %v1973_v24  ;;  %v1975_v22 = vpop.eup %1974 }
 0x6f3   :  { %v1252_v30 = vmul.f32 %v1975_v22, %v1251_v16 }
 0x6f5   :  { %v2612_v21 = vadd.f32 %v1973_v24, %v1252_v30 }
 0x6f7   :  { %v1254_v31 = vpack.c.bf16 %v2612_v21, %v2612_v21  ;;  %1256 = vst [vmem:[#allocation8 + $0x28] sm:$0xff] %v2612_v21 }
 0x6f9   :  { %1293 = vmatmul.mubr.bf16.vlgmr.msra.gmra.mrb[40].mxu0 %v1254_v31  ;;  %1816 = vmatmul.mubr.bf16.vlgmr.msra.gmra.mrb[32].mxu1 %v1254_v31 }
 0x6fa   :  { %1369 = vmatpush1.bf16.msra.mxu0 %v1997_v52  ;;  %1820 = vmatpush3.bf16.msra.mxu1 %v1998_v10  ;;  %v2675_v52 = vld [vmem:[#allocation13_spill] sm:$0xff] }
 0x6fb   :  { %1370 = vmatprep.subr.bf16.mxu0 %v1999_v38  ;;  %1821 = vmatprep.subr.bf16.mxu1 %v2672_v26 }
 0x6fc   :  { %1400 = vmatprep.mubr.bf16.mxu0 %v2673_v9  ;;  %1835 = vmatprep.mubr.msk.bf16.mxu1 %vm2093_vm12, %v2672_v26  ;;  %v2006_v9 = vld [vmem:[#allocation6 + $0x48] ss:$12 sps:$4 sm:$0xff]  }
 0x6fe   :  { %1371 = vmatpush1.bf16.msra.mxu0 %v2000_v0  ;;  %1822 = vmatpush3.bf16.msra.mxu1 %v2001_v34 }
 0x6ff   :  { %1372 = vmatprep.subr.bf16.mxu0 %v2002_v45  ;;  %1823 = vmatprep.subr.bf16.mxu1 %v2672_v26 }
 0x702   :  { %1373 = vmatpush1.bf16.msra.mxu0 %v2003_v49  ;;  %1824 = vmatpush3.bf16.msra.mxu1 %v2004_v55 }
 0x703   :  { %1374 = vmatprep.subr.bf16.mxu0 %v2005_v40  ;;  %1825 = vmatprep.subr.bf16.mxu1 %v2672_v26 }
 0x706   :  { %1375 = vmatpush1.bf16.msra.mxu0 %v2006_v9  ;;  %1826 = vmatpush3.bf16.msra.mxu1 %v2007_v25 }
 0x707   :  { %1376 = vmatprep.subr.bf16.mxu0 %v2008_v11  ;;  %1827 = vmatprep.subr.bf16.mxu1 %v2672_v26 }
 0x70a   :  { %1377 = vmatpush1.bf16.msra.mxu0 %v2009_v27  ;;  %1828 = vmatpush3.bf16.msra.mxu1 %v2010_v33 }
 0x70b   :  { %1378 = vmatprep.subr.bf16.mxu0 %v2011_v29  ;;  %1829 = vmatprep.subr.bf16.mxu1 %v2672_v26 }
 0x70e   :  { %1379 = vmatpush1.bf16.msra.mxu0 %v2012_v19  ;;  %1830 = vmatpush3.bf16.msra.mxu1 %v2270_v3 }
 0x70f   :  { %1380 = vmatprep.subr.bf16.mxu0 %v2013_v12  ;;  %1831 = vmatprep.subr.bf16.mxu1 %v2672_v26 }
 0x712   :  { %1381 = vmatpush1.bf16.msra.mxu0 %v2274_v4  ;;  %1832 = vmatpush3.bf16.msra.mxu1 %v2280_v6 }
 0x713   :  { %1382 = vmatprep.subr.bf16.mxu0 %v2277_v5  ;;  %1833 = vmatprep.subr.bf16.mxu1 %v2672_v26 }
 0x716   :  { %1383 = vmatpush1.bf16.msra.mxu0 %v2287_v7  ;;  %1834 = vmatpush3.bf16.msra.mxu1 %v2292_v8 }
 0x7cc   :  { %v1294_v36 = vpop.f32.mrb[40].mxu0  ;;  %v1335_v23 = vpop.f32.mrb[32].mxu1 }
 0x7cd   :  { %v1341_v3 = vadd.f32 %v1294_v36, %v2374_v28  ;;  %v1296_v17 = vpop.f32.mrb[41].mxu0  ;;  %v1817_v46 = vpop.f32.mrb[33].mxu1  ;;  %v1355_v8 = vadd.f32 %v2385_v14, %v1335_v23 }
 0x7ce   :  { %v1348_v15 = vadd.f32 %v1296_v17, %v2376_v35  ;;  %v1298_v39 = vpop.f32.mrb[42].mxu0  ;;  %v1338_v4 = vpop.f32.mrb[34].mxu1 }
 0x7cf   :  { %v1567_v53 = vmul.f32 -1.442695, %v1341_v3  ;;  %v1299_v6 = vpop.f32.mrb[43].mxu0  ;;  %v1818_v18 = vpop.f32.mrb[35].mxu1 }
 0x7d0   :  { %v1568_v5 = vmul.f32 -1.442695, %v1348_v15 }
 0x7d1   :  { %1976 = vpow2.f32 %v1567_v53 }
 0x7d2   :  { %1978 = vpow2.f32 %v1568_v5 }
 0x7db   :  { %v1977_v26 = vpop.eup %1976 }
 0x7dc   :  { %v1345_v41 = vadd.f32 1.0, %v1977_v26  ;;  %v1979_v7 = vpop.eup %1978 }
 0x7dd   :  { %v1352_v50 = vadd.f32 1.0, %v1979_v7 }
 0x7de   :  { %1980 = vrcp.f32 %v1345_v41 }
 0x7e8   :  { %v1981_v43 = vpop.eup %1980 }
 0x7e9   :  { %v1356_v28 = vmul.f32 %v1981_v43, %v1355_v8 }
 0x7eb   :  { %v1357_v48 = vadd.f32 %v1356_v28, %v2674_v44 }
 0x7ed   :  { %1982 = vtanh.f32 %v1357_v48 }
 0x7ee   :  { %1984 = vrcp.f32 %v1352_v50 }
 0x7f7   :  { %v1983_v35 = vpop.eup %1982 }
 0x7f8   :  { %v1359_v51 = vsub.f32 %v2612_v21, %v1983_v35  ;;  %v1985_v54 = vpop.eup %1984 }
 0x7fa   :  { %v1360_v56 = vmul.f32 %v1985_v54, %v1359_v51 }
 0x7fc   :  { %v1361_v57 = vadd.f32 %v1983_v35, %v1360_v56 }
 0x7fe   :  { %v1362_v58 = vpack.c.bf16 %v1361_v57, %v1361_v57  ;;  %1364 = vst [vmem:[#allocation8 + $0x30] sm:$0xff] %v1361_v57 }
 0x800   :  { %1401 = vmatmul.mubr.bf16.vlgmr.msra.gmra.mrb[44].mxu0 %v1362_v58  ;;  %1836 = vmatmul.mubr.bf16.vlgmr.msra.gmra.mrb[36].mxu1 %v1362_v58 }
 0x8d3   :  { %v1402_v59 = vpop.f32.mrb[44].mxu0  ;;  %v1443_v60 = vpop.f32.mrb[36].mxu1 }
 0x8d4   :  { %v1449_v61 = vadd.f32 %v1402_v59, %v2378_v37  ;;  %v1404_v62 = vpop.f32.mrb[45].mxu0  ;;  %v1837_v63 = vpop.f32.mrb[37].mxu1  ;;  %v1463_v21 = vadd.f32 %v2385_v14, %v1443_v60 }
 0x8d5   :  { %v1456_v1 = vadd.f32 %v1404_v62, %v2380_v42  ;;  %v1406_v2 = vpop.f32.mrb[46].mxu0  ;;  %v1446_v47 = vpop.f32.mrb[38].mxu1 }
 0x8d6   :  { %v1569_v20 = vmul.f32 -1.442695, %v1449_v61  ;;  %v1407_v32 = vpop.f32.mrb[47].mxu0  ;;  %v1838_v13 = vpop.f32.mrb[39].mxu1 }
 0x8d7   :  { %v1570_v24 = vmul.f32 -1.442695, %v1456_v1 }
 0x8d8   :  { %1986 = vpow2.f32 %v1569_v20 }
 0x8d9   :  { %1988 = vpow2.f32 %v1570_v24 }
 0x8e2   :  { %v1987_v16 = vpop.eup %1986 }
 0x8e3   :  { %v1453_v22 = vadd.f32 1.0, %v1987_v16  ;;  %v1989_v30 = vpop.eup %1988 }
 0x8e4   :  { %v1460_v38 = vadd.f32 1.0, %v1989_v30 }
 0x8e5   :  { %1990 = vrcp.f32 %v1453_v22 }
 0x8ef   :  { %v1991_v31 = vpop.eup %1990 }
 0x8f0   :  { %v1464_v37 = vmul.f32 %v1991_v31, %v1463_v21 }
 0x8f2   :  { %v1465_v10 = vadd.f32 %v1464_v37, %v2675_v52 }
 0x8f4   :  { %1992 = vtanh.f32 %v1465_v10 }
 0x8f5   :  { %1994 = vrcp.f32 %v1460_v38 }
 0x8fe   :  { %v1993_v42 = vpop.eup %1992 }
 0x8ff   :  { %v1467_v0 = vsub.f32 %v1361_v57, %v1993_v42  ;;  %v1995_v34 = vpop.eup %1994 }
 0x901   :  { %v1468_v45 = vmul.f32 %v1995_v34, %v1467_v0 }
 0x903   :  { %v1469_v49 = vadd.f32 %v1993_v42, %v1468_v45 }
 0x905   :  { %1471 = vst [vmem:[#allocation8 + $0x38] sm:$0xff] %v1469_v49 }
 0x906   :  { %2069 = shalt.err (!%p2066_p6)
}
 0x907   :  { %s2070_s14 = scalar_lea.hbm %s2659_s5, 1024 }
 0x908   :  { %p2071_p7 = scmp.ne.s32.totalorder %s2659_s5, %s2070_s14  ;;  %p2074_p8 = scmp.lt.u32.totalorder %s2070_s14, %s2659_s5 }
 0x90a   :  { %p2076_p9 = pnand %p2074_p8, %p2071_p7 }
 0x90c   :  { %2079 = shalt.err (!%p2076_p9)
}
 0x90d   :  { %s2095_s18 = smov 128   ;;  %s2096_s19 = smov 8  }
 0x90e   :  { %1483 = dma.vmem_to_hbm [thread:$0]  %s1478_s10, 1024, %s2659_s5, [#allocation5], %s2095_s18, %s2095_s18, %s2096_s19  }
 0x90f   :  { %2084 = dma.done.wait [#allocation5], 1024  }
 0x910   :  { %2085 = vsyncadd [#allocation5], 4294966272 }
 0x911   :  { %1487 = vsyncpa [#allocation4], 1 }
 0x912   :  { %1488 = vsyncpa [#allocation7], 1 }
 0x913   :  { %1489 = vsyncpa [#allocation5], 1 }

</bundles_post_ra>
